<compile_context>
chip_gen: v7x
topology: tpu7x:2x2x1
jax: 0.10.0
libtpu: 0.0.40
codegen_flags: <defaults>
</compile_context>

<pallas_src>
import functools

import jax
import jax.numpy as jnp
from jax.experimental import pallas as pl
from jax.experimental.pallas import tpu as pltpu


def _mlp_kernel(num_hidden, *refs):
    """Fused MLP forward over one [TB, in_features] batch tile.

    refs layout:
      x_ref,
      (w_ref, b_ref) * num_hidden,   # hidden layers (W: bf16 [in,out], b: f32 [1,out])
      wo_ref, bo_ref,                # output layer (class axis padded to 128)
      out_ref                        # [TB, padded_classes] log-softmax (f32)
    """
    x_ref = refs[0]
    out_ref = refs[-1]
    p = refs[1:-1]

    h = x_ref[...]  # f32 activations [TB, in_features]

    # Hidden layers: Linear (bf16 MXU, f32 accumulate) -> bias add + ReLU (f32 VPU).
    for li in range(num_hidden):
        w_ref = p[2 * li]
        b = p[2 * li + 1][...]  # hoisted bias read, f32 [1, out]
        acc = jnp.dot(h.astype(w_ref.dtype), w_ref[...],
                      preferred_element_type=jnp.float32)
        h = jnp.maximum(acc + b, 0.0)
        # dropout: identity in eval mode

    wo_ref = p[2 * num_hidden]
    bo = p[2 * num_hidden + 1][...]  # f32 [1, padded_classes]; pad lanes = -1e30
    logits = jnp.dot(h.astype(wo_ref.dtype), wo_ref[...],
                     preferred_element_type=jnp.float32) + bo

    # log_softmax along the class axis. Pad lanes carry ~-1e30 logits, so they
    # never win the max and exp() of them underflows to 0 -> exact normalization
    # over the real classes.
    m = jnp.max(logits, axis=1, keepdims=True)
    shifted = logits - m
    lse = jnp.log(jnp.sum(jnp.exp(shifted), axis=1, keepdims=True))
    out_ref[...] = (shifted - lse).astype(out_ref.dtype)


def nn_classifier_forward(x, params, output_size, *, tb=128):
    """x: [B, C, H, W] (NCHW). params: list of (W[in,out] f32, b[1,out] f32)."""
    B = x.shape[0]
    x2d = x.reshape(B, -1).astype(jnp.float32)  # flatten (plain-JAX glue)
    in_features = x2d.shape[1]

    # --- batch padding to MXU-sized tiles (and >= 8 f32 sublanes) ---
    b_pad = max(tb, pl.cdiv(B, tb) * tb)
    if b_pad != B:
        x2d = jnp.pad(x2d, ((0, b_pad - B), (0, 0)))

    num_hidden = len(params) - 1

    # --- class-axis padding to a lane-dense multiple of 128 ---
    c_pad = max(128, pl.cdiv(output_size, 128) * 128)
    wo, bo = params[-1]
    if c_pad != output_size:
        wo = jnp.pad(wo, ((0, 0), (0, c_pad - output_size)))
        bo = jnp.pad(bo, ((0, 0), (0, c_pad - output_size)),
                     constant_values=-1e30)  # mask pad lanes out of softmax

    # bf16 weights for the MXU path; biases stay f32 for the elementwise path.
    kernel_params = [(w.astype(jnp.bfloat16), b) for (w, b) in params[:-1]]
    kernel_params.append((wo.astype(jnp.bfloat16), bo))

    flat_args = [x2d]
    for (w, b) in kernel_params:
        flat_args.append(w)
        flat_args.append(b)

    # BlockSpecs: activation / output tiled over the batch grid; weights & biases
    # full-block and constant-indexed so they stay resident in VMEM.
    # TODO(synk): for layer widths where the weight set no longer fits in VMEM,
    # switch weight specs to tiled K/N blocks with a reduction grid axis.
    in_specs = [pl.BlockSpec((tb, in_features), lambda i: (i, 0))]
    for (w, b) in kernel_params:
        in_specs.append(pl.BlockSpec(w.shape, lambda i: (0, 0)))
        in_specs.append(pl.BlockSpec(b.shape, lambda i: (0, 0)))
    out_spec = pl.BlockSpec((tb, c_pad), lambda i: (i, 0))

    # Advisory cost estimate for XLA scheduling around the custom call.
    flops = 2 * b_pad * sum(w.shape[0] * w.shape[1] for (w, _) in kernel_params)
    transcendentals = b_pad * (c_pad + 1)  # exp per class + log per row
    bytes_accessed = (x2d.size * 4 + b_pad * c_pad * 4
                      + sum(w.size * 2 + b.size * 4 for (w, b) in kernel_params))
    cost = pl.CostEstimate(flops=flops, transcendentals=transcendentals,
                           bytes_accessed=bytes_accessed)

    kernel = functools.partial(_mlp_kernel, num_hidden)

    out = pl.pallas_call(
        kernel,
        out_shape=jax.ShapeDtypeStruct((b_pad, c_pad), jnp.float32),
        grid_spec=pltpu.PrefetchScalarGridSpec(
            num_scalar_prefetch=0,
            grid=(b_pad // tb,),
            in_specs=in_specs,
            out_specs=out_spec,
        ),
        compiler_params=pltpu.CompilerParams(
            dimension_semantics=("parallel",),  # megacore sharding on v7x
        ),
        cost_estimate=cost,
    )(*flat_args)

    return out[:B, :output_size]


def init_params(key, input_size, hidden_layers, output_size):
    """nn.Linear-style init (uniform +/- 1/sqrt(fan_in)); W stored [in, out]."""
    params = []
    sizes = [input_size] + list(hidden_layers) + [output_size]
    for fan_in, fan_out in zip(sizes[:-1], sizes[1:]):
        key, kw, kb = jax.random.split(key, 3)
        bound = 1.0 / (fan_in ** 0.5)
        w = jax.random.uniform(kw, (fan_in, fan_out), jnp.float32, -bound, bound)
        b = jax.random.uniform(kb, (1, fan_out), jnp.float32, -bound, bound)
        params.append((w, b))
    return params


if __name__ == "__main__":
    key = jax.random.PRNGKey(0)

    # Small shapes consistent with the module: NCHW image flattened to features.
    B, C, H, W = 2, 4, 16, 16
    input_size = C * H * W            # 1024
    hidden_layers = [128, 64]
    output_size = 10

    key, kx = jax.random.split(key)
    x = jax.random.normal(kx, (B, C, H, W), jnp.float32)

    params = init_params(key, input_size, hidden_layers, output_size)

    out = nn_classifier_forward(x, params, output_size)
    out = jax.block_until_ready(out)
    assert out.shape == (B, output_size)

    # Sanity check vs. plain-JAX f32 reference (eval-mode dropout == identity).
    # Kernel uses bf16 MXU operands with f32 accumulation -> loose-ish tolerance.
    h_ref = x.reshape(B, -1)
    for (w, b) in params[:-1]:
        h_ref = jnp.maximum(h_ref @ w + b, 0.0)
    logits_ref = h_ref @ params[-1][0] + params[-1][1]
    ref = jax.nn.log_softmax(logits_ref, axis=1)
    assert jnp.allclose(out, ref, atol=5e-2, rtol=5e-2), "mismatch vs reference"

    print("KERNEL_OK")
</pallas_src>

<mosaic_0001>
module attributes {stable_mosaic.version = 11 : i64} {
  func.func @_mlp_kernel(%arg0: i32, %arg1: memref<128x1024xf32, #tpu.memory_space<vmem>>, %arg2: memref<1024x128xbf16, #tpu.memory_space<vmem>>, %arg3: memref<1x128xf32, #tpu.memory_space<vmem>>, %arg4: memref<128x64xbf16, #tpu.memory_space<vmem>>, %arg5: memref<1x64xf32, #tpu.memory_space<vmem>>, %arg6: memref<64x128xbf16, #tpu.memory_space<vmem>>, %arg7: memref<1x128xf32, #tpu.memory_space<vmem>>, %arg8: memref<128x128xf32, #tpu.memory_space<vmem>>) attributes {dimension_semantics = [#tpu.dimension_semantics<parallel>], iteration_bounds = array<i64: 1>, scalar_prefetch = 0 : i64, scratch_operands = 0 : i64, tpu.core_type = #tpu.core_type<tc>, window_params = [{transform_indices = @transform_0, window_bounds = array<i64: 128, 1024>}, {pipeline_mode = #tpu.pipeline_mode<synchronous>, transform_indices = @transform_1, window_bounds = array<i64: 1024, 128>}, {pipeline_mode = #tpu.pipeline_mode<synchronous>, transform_indices = @transform_2, window_bounds = array<i64: 1, 128>}, {pipeline_mode = #tpu.pipeline_mode<synchronous>, transform_indices = @transform_3, window_bounds = array<i64: 128, 64>}, {pipeline_mode = #tpu.pipeline_mode<synchronous>, transform_indices = @transform_4, window_bounds = array<i64: 1, 64>}, {pipeline_mode = #tpu.pipeline_mode<synchronous>, transform_indices = @transform_5, window_bounds = array<i64: 64, 128>}, {pipeline_mode = #tpu.pipeline_mode<synchronous>, transform_indices = @transform_6, window_bounds = array<i64: 1, 128>}, {transform_indices = @transform_7, window_bounds = array<i64: 128, 128>}]} {
    %c0 = arith.constant 0 : index
    %c0_0 = arith.constant 0 : index
    %0 = vector.load %arg1[%c0, %c0_0] : memref<128x1024xf32, #tpu.memory_space<vmem>>, vector<128x1024xf32>
    %c0_1 = arith.constant 0 : index
    %c0_2 = arith.constant 0 : index
    %1 = vector.load %arg3[%c0_1, %c0_2] : memref<1x128xf32, #tpu.memory_space<vmem>>, vector<1x128xf32>
    %2 = arith.truncf %0 : vector<128x1024xf32> to vector<128x1024xbf16>
    %c0_3 = arith.constant 0 : index
    %c0_4 = arith.constant 0 : index
    %3 = vector.load %arg2[%c0_3, %c0_4] : memref<1024x128xbf16, #tpu.memory_space<vmem>>, vector<1024x128xbf16>
    %cst = arith.constant dense<0.000000e+00> : vector<128x128xf32>
    %4 = tpu.matmul %2, %3, %cst {dimension_numbers = #tpu.dot_dimension_numbers<[1], [0], [0], [1], [0, 0, 1, 1], [], []>} : vector<128x1024xbf16>, vector<1024x128xbf16>, vector<128x128xf32> -> vector<128x128xf32>
    %5 = vector.broadcast %1 : vector<1x128xf32> to vector<128x128xf32>
    %6 = arith.addf %4, %5 : vector<128x128xf32>
    %cst_5 = arith.constant 0.000000e+00 : f32
    %7 = vector.broadcast %cst_5 : f32 to vector<128x128xf32>
    %8 = arith.maximumf %6, %7 : vector<128x128xf32>
    %c0_6 = arith.constant 0 : index
    %c0_7 = arith.constant 0 : index
    %9 = vector.load %arg5[%c0_6, %c0_7] : memref<1x64xf32, #tpu.memory_space<vmem>>, vector<1x64xf32>
    %10 = arith.truncf %8 : vector<128x128xf32> to vector<128x128xbf16>
    %c0_8 = arith.constant 0 : index
    %c0_9 = arith.constant 0 : index
    %11 = vector.load %arg4[%c0_8, %c0_9] : memref<128x64xbf16, #tpu.memory_space<vmem>>, vector<128x64xbf16>
    %cst_10 = arith.constant dense<0.000000e+00> : vector<128x64xf32>
    %12 = tpu.matmul %10, %11, %cst_10 {dimension_numbers = #tpu.dot_dimension_numbers<[1], [0], [0], [1], [0, 0, 1, 1], [], []>} : vector<128x128xbf16>, vector<128x64xbf16>, vector<128x64xf32> -> vector<128x64xf32>
    %13 = vector.broadcast %9 : vector<1x64xf32> to vector<128x64xf32>
    %14 = arith.addf %12, %13 : vector<128x64xf32>
    %cst_11 = arith.constant 0.000000e+00 : f32
    %15 = vector.broadcast %cst_11 : f32 to vector<128x64xf32>
    %16 = arith.maximumf %14, %15 : vector<128x64xf32>
    %c0_12 = arith.constant 0 : index
    %c0_13 = arith.constant 0 : index
    %17 = vector.load %arg7[%c0_12, %c0_13] : memref<1x128xf32, #tpu.memory_space<vmem>>, vector<1x128xf32>
    %18 = arith.truncf %16 : vector<128x64xf32> to vector<128x64xbf16>
    %c0_14 = arith.constant 0 : index
    %c0_15 = arith.constant 0 : index
    %19 = vector.load %arg6[%c0_14, %c0_15] : memref<64x128xbf16, #tpu.memory_space<vmem>>, vector<64x128xbf16>
    %cst_16 = arith.constant dense<0.000000e+00> : vector<128x128xf32>
    %20 = tpu.matmul %18, %19, %cst_16 {dimension_numbers = #tpu.dot_dimension_numbers<[1], [0], [0], [1], [0, 0, 1, 1], [], []>} : vector<128x64xbf16>, vector<64x128xbf16>, vector<128x128xf32> -> vector<128x128xf32>
    %21 = vector.broadcast %17 : vector<1x128xf32> to vector<128x128xf32>
    %22 = arith.addf %20, %21 : vector<128x128xf32>
    %cst_17 = arith.constant dense<0xFF800000> : vector<128xf32>
    %23 = vector.multi_reduction <maximumf>, %22, %cst_17 [1] : vector<128x128xf32> to vector<128xf32>
    %24 = vector.shape_cast %23 : vector<128xf32> to vector<128x1xf32>
    %25 = vector.broadcast %24 : vector<128x1xf32> to vector<128x128xf32>
    %26 = arith.subf %22, %25 : vector<128x128xf32>
    %27 = math.exp %26 : vector<128x128xf32>
    %cst_18 = arith.constant dense<0.000000e+00> : vector<128xf32>
    %28 = vector.multi_reduction <add>, %27, %cst_18 [1] : vector<128x128xf32> to vector<128xf32>
    %29 = vector.shape_cast %28 : vector<128xf32> to vector<128x1xf32>
    %30 = math.log %29 : vector<128x1xf32>
    %31 = vector.broadcast %30 : vector<128x1xf32> to vector<128x128xf32>
    %32 = arith.subf %26, %31 : vector<128x128xf32>
    %c0_19 = arith.constant 0 : index
    %c0_20 = arith.constant 0 : index
    %33 = vector.load %arg8[%c0_19, %c0_20] : memref<128x128xf32, #tpu.memory_space<vmem>>, vector<128x128xf32>
    tpu.vector_store %arg8[%c0_19, %c0_20], %32 {strides = array<i32>} : memref<128x128xf32, #tpu.memory_space<vmem>>, vector<128x128xf32>,
    return
  }
  func.func @transform_0(%arg0: i32) -> (i32, i32) {
    %c0_i32 = arith.constant 0 : i32
    %c0_i32_0 = arith.constant 0 : i32
    return %arg0, %c0_i32 : i32, i32
  }
  func.func @transform_1(%arg0: i32) -> (i32, i32) {
    %c0_i32 = arith.constant 0 : i32
    %c0_i32_0 = arith.constant 0 : i32
    %c0_i32_1 = arith.constant 0 : i32
    return %c0_i32, %c0_i32_0 : i32, i32
  }
  func.func @transform_2(%arg0: i32) -> (i32, i32) {
    %c0_i32 = arith.constant 0 : i32
    %c0_i32_0 = arith.constant 0 : i32
    %c0_i32_1 = arith.constant 0 : i32
    return %c0_i32, %c0_i32_0 : i32, i32
  }
  func.func @transform_3(%arg0: i32) -> (i32, i32) {
    %c0_i32 = arith.constant 0 : i32
    %c0_i32_0 = arith.constant 0 : i32
    %c0_i32_1 = arith.constant 0 : i32
    return %c0_i32, %c0_i32_0 : i32, i32
  }
  func.func @transform_4(%arg0: i32) -> (i32, i32) {
    %c0_i32 = arith.constant 0 : i32
    %c0_i32_0 = arith.constant 0 : i32
    %c0_i32_1 = arith.constant 0 : i32
    return %c0_i32, %c0_i32_0 : i32, i32
  }
  func.func @transform_5(%arg0: i32) -> (i32, i32) {
    %c0_i32 = arith.constant 0 : i32
    %c0_i32_0 = arith.constant 0 : i32
    %c0_i32_1 = arith.constant 0 : i32
    return %c0_i32, %c0_i32_0 : i32, i32
  }
  func.func @transform_6(%arg0: i32) -> (i32, i32) {
    %c0_i32 = arith.constant 0 : i32
    %c0_i32_0 = arith.constant 0 : i32
    %c0_i32_1 = arith.constant 0 : i32
    return %c0_i32, %c0_i32_0 : i32, i32
  }
  func.func @transform_7(%arg0: i32) -> (i32, i32) {
    %c0_i32 = arith.constant 0 : i32
    %c0_i32_0 = arith.constant 0 : i32
    return %arg0, %c0_i32 : i32, i32
  }
}

</mosaic_0001>

<bundles_post_ra>
// kernel: tpu_custom_call.1
= control target key start
LH: loop header
LB: loop body
LE: loop exit
PB: predicated region body
PF: predicated region fallthrough
CT: control target
= control target key end

     0   :  { %12 = vsyncpa [#allocation3], 0  ;;  %s2672_s0 = inlined_call_operand.hbm [shape: f32[128,1024], index: 0, kind: input, shape index: {}]   ;;  %s2673_s1 = inlined_call_operand.hbm [shape: bf16[1024,128], index: 1, kind: input, shape index: {}]   ;;  %s2674_s2 = inlined_call_operand.vmem [shape: f32[1,128], index: 2, kind: input, shape index: {}]   ;;  %s2675_s3 = inlined_call_operand.vmem [shape: bf16[128,64], index: 3, kind: input, shape index: {}]   ;;  %s2676_s4 = inlined_call_operand.vmem [shape: f32[1,64], index: 4, kind: input, shape index: {}]   ;;  %s2677_s5 = inlined_call_operand.vmem [shape: bf16[64,128], index: 5, kind: input, shape index: {}]   ;;  %s2678_s6 = inlined_call_operand.vmem [shape: f32[1,128], index: 6, kind: input, shape index: {}]   ;;  %s2679_s7 = inlined_call_operand.hbm [shape: f32[128,128], index: 7, kind: output, shape index: {}]  }
   0x1   :  { %13 = vsyncpa [#allocation6], 0 }
   0x2   :  { %14 = vsyncpa [#allocation4], 0  ;;  %s2373_s24 = smov [#allocation2]   ;;  %s2301_s28 = scalar_lea.hbm %s2672_s0, 16384 }
   0x3   :  { %s20_s25 = sshll.u32 %s2373_s24, 4  ;;  %p2302_p0 = scmp.ne.s32.totalorder %s2672_s0, %s2301_s28  ;;  %s21_s25 = int_to_ptr.vmem [resolvable:$true] %s20_s25 }
   0x4   :  { %p2305_p1 = scmp.lt.u32.totalorder %s2301_s28, %s2672_s0 }
   0x6   :  { %p2307_p2 = pnand %p2305_p1, %p2302_p0 }
   0x8   :  { %2310 = shalt.err (!%p2307_p2)
}
   0x9   :  { %s2311_s10 = scalar_lea.vmem %s21_s25, 16384  ;;  %p2316_p4 = scmp.lt.s32.totalorder %s21_s25, %s21_s25 }
   0xa   :  { %p2312_p3 = scmp.ne.s32.totalorder %s21_s25, %s2311_s10  ;;  %p2317_p5 = scmp.lt.s32.totalorder %s2311_s10, %s2311_s10 }
   0xc   :  { %p2318_p6 = por %p2317_p5, %p2316_p4 }
   0xe   :  { %p2319_p7 = pnand %p2318_p6, %p2312_p3 }
  0x10   :  { %2322 = shalt.err (!%p2319_p7)
}
  0x11   :  { %s2374_s11 = smov 1024   ;;  %s2375_s12 = smov 64  }
  0x12   :  { %26 = dma.hbm_to_vmem [thread:$0]  %s2672_s0, 16384, %s21_s25, [#allocation3], %s2374_s11, %s2374_s11, %s2375_s12  }
  0x13   :  { %s2376_s15 = smov [#allocation5]   ;;  %s2323_s19 = scalar_lea.hbm %s2673_s1, 8192 }
  0x14   :  { %s32_s16 = sshll.u32 %s2376_s15, 4  ;;  %p2324_p8 = scmp.ne.s32.totalorder %s2673_s1, %s2323_s19  ;;  %s33_s16 = int_to_ptr.vmem [resolvable:$true] %s32_s16 }
  0x15   :  { %p2327_p9 = scmp.lt.u32.totalorder %s2323_s19, %s2673_s1 }
  0x17   :  { %p2329_p10 = pnand %p2327_p9, %p2324_p8 }
  0x19   :  { %2332 = shalt.err (!%p2329_p10)
}
  0x1a   :  { %s2333_s24 = scalar_lea.vmem %s33_s16, 8192  ;;  %p2338_p12 = scmp.lt.s32.totalorder %s33_s16, %s33_s16 }
  0x1b   :  { %p2334_p11 = scmp.ne.s32.totalorder %s33_s16, %s2333_s24  ;;  %p2339_p13 = scmp.lt.s32.totalorder %s2333_s24, %s2333_s24 }
  0x1d   :  { %p2340_p0 = por %p2339_p13, %p2338_p12 }
  0x1f   :  { %p2341_p1 = pnand %p2340_p0, %p2334_p11 }
  0x21   :  { %2344 = shalt.err (!%p2341_p1)
}
  0x22   :  { %s2377_s0 = smov 4  }
  0x23   :  { %38 = dma.hbm_to_vmem [thread:$0]  %s2673_s1, 8192, %s33_s16, [#allocation6], %s2375_s12, %s2375_s12, %s2377_s0  }
  0x24   :  { %2367 = dma.done.wait [#allocation3], 16384  }
  0x25   :  { %2368 = vsyncadd [#allocation3], 4294950912 }
  0x26   :  { %2369 = dma.done.wait [#allocation6], 8192  }
  0x27   :  { %2370 = vsyncadd [#allocation6], 4294959104  ;;  %v2161_v0 = vld [vmem:[#allocation5 + $0x40] sm:$0xff]   ;;  %v2165_v4 = vld [vmem:[#allocation5 + $0x48] sm:$0xff]   ;;  %vm1410_vm0 = vcmask 523264  }
  0x28   :  { %v2162_v1 = vld [vmem:[#allocation5 + $0xc0] sm:$0xff]   ;;  %1813 = vmatprep.subr.bf16.mxu0 %v2161_v0  ;;  %v2166_v5 = vld [vmem:[#allocation5 + $0xc8] sm:$0xff]   ;;  %v2169_v8 = vld [vmem:[#allocation5 + $0x50] sm:$0xff]  }
  0x29   :  { %v2163_v2 = vld [vmem:[#allocation5] sm:$0xff]   ;;  %1877 = vmatprep.subr.bf16.mxu1 %v2162_v1  ;;  %v2167_v6 = vld [vmem:[#allocation5 + $0x8] sm:$0xff]   ;;  %v2170_v9 = vld [vmem:[#allocation5 + $0xd0] sm:$0xff]  }
  0x2a   :  { %v2164_v3 = vld [vmem:[#allocation5 + $0x80] sm:$0xff]   ;;  %1814 = vmatpush3.bf16.msra.mxu0 %v2163_v2  ;;  %v2168_v7 = vld [vmem:[#allocation5 + $0x88] sm:$0xff]   ;;  %v2171_v10 = vld [vmem:[#allocation5 + $0x10] sm:$0xff]  }
  0x2b   :  { %1878 = vmatpush3.bf16.msra.mxu1 %v2164_v3  ;;  %1815 = vmatprep.subr.bf16.mxu0 %v2165_v4  ;;  %v2172_v11 = vld [vmem:[#allocation5 + $0x90] sm:$0xff]   ;;  %v2173_v12 = vld [vmem:[#allocation5 + $0x58] sm:$0xff]   ;;  %v2177_v16 = vld [vmem:[#allocation5 + $0x60] sm:$0xff]  }
  0x2c   :  { %1879 = vmatprep.subr.bf16.mxu1 %v2166_v5  ;;  %v2174_v13 = vld [vmem:[#allocation5 + $0xd8] sm:$0xff]   ;;  %v2178_v17 = vld [vmem:[#allocation5 + $0xe0] sm:$0xff]   ;;  %v2181_v20 = vld [vmem:[#allocation5 + $0x68] sm:$0xff]  }
  0x2d   :  { %v2175_v14 = vld [vmem:[#allocation5 + $0x18] sm:$0xff]   ;;  %v2179_v18 = vld [vmem:[#allocation5 + $0x20] sm:$0xff]   ;;  %v2182_v21 = vld [vmem:[#allocation5 + $0xe8] sm:$0xff]  }
  0x2e   :  { %1816 = vmatpush3.bf16.msra.mxu0 %v2167_v6  ;;  %v2176_v15 = vld [vmem:[#allocation5 + $0x98] sm:$0xff]   ;;  %v2180_v19 = vld [vmem:[#allocation5 + $0xa0] sm:$0xff]   ;;  %v2183_v22 = vld [vmem:[#allocation5 + $0x28] sm:$0xff]  }
  0x2f   :  { %1880 = vmatpush3.bf16.msra.mxu1 %v2168_v7  ;;  %1817 = vmatprep.subr.bf16.mxu0 %v2169_v8  ;;  %v2184_v23 = vld [vmem:[#allocation5 + $0xa8] sm:$0xff]   ;;  %v2185_v24 = vld [vmem:[#allocation5 + $0x70] sm:$0xff]   ;;  %v2189_v28 = vld [vmem:[#allocation5 + $0x78] sm:$0xff]  }
  0x30   :  { %1881 = vmatprep.subr.bf16.mxu1 %v2170_v9  ;;  %v2186_v25 = vld [vmem:[#allocation5 + $0xf0] sm:$0xff]   ;;  %v2190_v29 = vld [vmem:[#allocation5 + $0xf8] sm:$0xff]   ;;  %v57_v32 = vld [vmem:[#allocation2 + $0x8] sm:$0xff] }
  0x31   :  { %v2187_v26 = vld [vmem:[#allocation5 + $0x30] sm:$0xff]   ;;  %v2191_v30 = vld [vmem:[#allocation5 + $0x38] sm:$0xff]   ;;  %v65_v33 = vld [vmem:[#allocation2 + $0x48] sm:$0xff] }
  0x32   :  { %1818 = vmatpush3.bf16.msra.mxu0 %v2171_v10  ;;  %v2188_v27 = vld [vmem:[#allocation5 + $0xb0] sm:$0xff]   ;;  %v2192_v31 = vld [vmem:[#allocation5 + $0xb8] sm:$0xff]   ;;  %v186_v35 = vpack.c.bf16 %v65_v33, %v57_v32  ;;  %v56_v37 = vld [vmem:[#allocation2] sm:$0xff] }
  0x33   :  { %1882 = vmatpush3.bf16.msra.mxu1 %v2172_v11  ;;  %1819 = vmatprep.subr.bf16.mxu0 %v2173_v12  ;;  %v59_v34 = vld [vmem:[#allocation2 + $0x18] sm:$0xff]  ;;  %v64_v38 = vld [vmem:[#allocation2 + $0x40] sm:$0xff]  ;;  %v58_v41 = vld [vmem:[#allocation2 + $0x10] sm:$0xff] }
  0x34   :  { %1883 = vmatprep.subr.bf16.mxu1 %v2174_v13  ;;  %v67_v36 = vld [vmem:[#allocation2 + $0x58] sm:$0xff]  ;;  %v185_v40 = vpack.c.bf16 %v64_v38, %v56_v37  ;;  %v66_v42 = vld [vmem:[#allocation2 + $0x50] sm:$0xff]  ;;  %799 = vmatprep.mubr.bf16.mxu0 %v186_v35  ;;  %v2193_v44 = vld [vmem:[#allocation5 + $0x140] sm:$0xff]  }
  0x35   :  { %v188_v39 = vpack.c.bf16 %v67_v36, %v59_v34  ;;  %v187_v43 = vpack.c.bf16 %v66_v42, %v58_v41  ;;  %v2194_v45 = vld [vmem:[#allocation5 + $0x100] sm:$0xff]   ;;  %v73_v48 = vld [vmem:[#allocation2 + $0x88] sm:$0xff]  ;;  %v75_v50 = vld [vmem:[#allocation2 + $0x98] sm:$0xff] }
  0x36   :  { %1820 = vmatpush3.bf16.msra.mxu0 %v2175_v14  ;;  %v2195_v46 = vld [vmem:[#allocation5 + $0x1c0] sm:$0xff]   ;;  %v81_v49 = vld [vmem:[#allocation2 + $0xc8] sm:$0xff]  ;;  %v83_v51 = vld [vmem:[#allocation2 + $0xd8] sm:$0xff] }
  0x37   :  { %1884 = vmatpush3.bf16.msra.mxu1 %v2176_v15  ;;  %1821 = vmatprep.subr.bf16.mxu0 %v2177_v16  ;;  %v2196_v47 = vld [vmem:[#allocation5 + $0x180] sm:$0xff]   ;;  %v194_v52 = vpack.c.bf16 %v81_v49, %v73_v48  ;;  %v196_v53 = vpack.c.bf16 %v83_v51, %v75_v50  ;;  %v74_v56 = vld [vmem:[#allocation2 + $0x90] sm:$0xff]  ;;  %v2197_v60 = vld [vmem:[#allocation5 + $0x148] sm:$0xff]  }
  0x38   :  { %1885 = vmatprep.subr.bf16.mxu1 %v2178_v17  ;;  %896 = vmatprep.mubr.bf16.mxu1 %v188_v39  ;;  %v72_v54 = vld [vmem:[#allocation2 + $0x80] sm:$0xff]  ;;  %v82_v58 = vld [vmem:[#allocation2 + $0xd0] sm:$0xff]  ;;  %v2198_v61 = vld [vmem:[#allocation5 + $0x108] sm:$0xff]  }
  0x39   :  { %v80_v55 = vld [vmem:[#allocation2 + $0xc0] sm:$0xff]  ;;  %v195_v59 = vpack.c.bf16 %v82_v58, %v74_v56  ;;  %v2199_v62 = vld [vmem:[#allocation5 + $0x1c8] sm:$0xff]   ;;  %v91_v3 = vld [vmem:[#allocation2 + $0x118] sm:$0xff] }
  0x3a   :  { %1822 = vmatpush3.bf16.msra.mxu0 %v2179_v18  ;;  %v193_v57 = vpack.c.bf16 %v80_v55, %v72_v54  ;;  %v2200_v63 = vld [vmem:[#allocation5 + $0x188] sm:$0xff]   ;;  %v99_v4 = vld [vmem:[#allocation2 + $0x158] sm:$0xff]  ;;  %v88_v5 = vld [vmem:[#allocation2 + $0x100] sm:$0xff] }
  0x3b   :  { %1886 = vmatpush3.bf16.msra.mxu1 %v2180_v19  ;;  %1823 = vmatprep.subr.bf16.mxu0 %v2181_v20  ;;  %v89_v0 = vld [vmem:[#allocation2 + $0x108] sm:$0xff]  ;;  %v204_v6 = vpack.c.bf16 %v99_v4, %v91_v3  ;;  %v96_v7 = vld [vmem:[#allocation2 + $0x140] sm:$0xff]  ;;  %v90_v8 = vld [vmem:[#allocation2 + $0x110] sm:$0xff] }
  0x3c   :  { %1887 = vmatprep.subr.bf16.mxu1 %v2182_v21  ;;  %v97_v1 = vld [vmem:[#allocation2 + $0x148] sm:$0xff]  ;;  %v98_v9 = vld [vmem:[#allocation2 + $0x150] sm:$0xff]  ;;  %v201_v10 = vpack.c.bf16 %v96_v7, %v88_v5  ;;  %v107_v18 = vld [vmem:[#allocation2 + $0x198] sm:$0xff] }
  0x3d   :  { %v202_v2 = vpack.c.bf16 %v97_v1, %v89_v0  ;;  %v2201_v11 = vld [vmem:[#allocation5 + $0x150] sm:$0xff]   ;;  %v203_v12 = vpack.c.bf16 %v98_v9, %v90_v8  ;;  %v105_v16 = vld [vmem:[#allocation2 + $0x188] sm:$0xff]  ;;  %v115_v20 = vld [vmem:[#allocation2 + $0x1d8] sm:$0xff] }
  0x3e   :  { %1824 = vmatpush3.bf16.msra.mxu0 %v2183_v22  ;;  %v2202_v13 = vld [vmem:[#allocation5 + $0x110] sm:$0xff]   ;;  %v113_v17 = vld [vmem:[#allocation2 + $0x1c8] sm:$0xff]  ;;  %v104_v21 = vld [vmem:[#allocation2 + $0x180] sm:$0xff] }
  0x3f   :  { %1888 = vmatpush3.bf16.msra.mxu1 %v2184_v23  ;;  %1825 = vmatprep.subr.bf16.mxu0 %v2185_v24  ;;  %v2203_v14 = vld [vmem:[#allocation5 + $0x1d0] sm:$0xff]   ;;  %v210_v19 = vpack.c.bf16 %v113_v17, %v105_v16  ;;  %v112_v22 = vld [vmem:[#allocation2 + $0x1c0] sm:$0xff]  ;;  %v212_v23 = vpack.c.bf16 %v115_v20, %v107_v18  ;;  %v121_v32 = vld [vmem:[#allocation2 + $0x208] sm:$0xff] }
  0x40   :  { %1889 = vmatprep.subr.bf16.mxu1 %v2186_v25  ;;  %v2204_v15 = vld [vmem:[#allocation5 + $0x190] sm:$0xff]   ;;  %v129_v33 = vld [vmem:[#allocation2 + $0x248] sm:$0xff]  ;;  %v123_v34 = vld [vmem:[#allocation2 + $0x218] sm:$0xff] }
  0x41   :  { %v106_v24 = vld [vmem:[#allocation2 + $0x190] sm:$0xff]  ;;  %v131_v35 = vld [vmem:[#allocation2 + $0x258] sm:$0xff]  ;;  %v218_v36 = vpack.c.bf16 %v129_v33, %v121_v32  ;;  %v120_v38 = vld [vmem:[#allocation2 + $0x200] sm:$0xff] }
  0x42   :  { %1826 = vmatpush3.bf16.msra.mxu0 %v2187_v26  ;;  %v114_v25 = vld [vmem:[#allocation2 + $0x1d0] sm:$0xff]  ;;  %v2205_v26 = vld [vmem:[#allocation5 + $0x158] sm:$0xff]   ;;  %v220_v37 = vpack.c.bf16 %v131_v35, %v123_v34  ;;  %v128_v39 = vld [vmem:[#allocation2 + $0x240] sm:$0xff] }
  0x43   :  { %1890 = vmatpush3.bf16.msra.mxu1 %v2188_v27  ;;  %1827 = vmatprep.subr.bf16.mxu0 %v2189_v28  ;;  %v209_v27 = vpack.c.bf16 %v112_v22, %v104_v21  ;;  %v2206_v28 = vld [vmem:[#allocation5 + $0x118] sm:$0xff]   ;;  %v130_v41 = vld [vmem:[#allocation2 + $0x250] sm:$0xff]  ;;  %v2209_v42 = vld [vmem:[#allocation5 + $0x160] sm:$0xff]  }
  0x44   :  { %1891 = vmatprep.subr.bf16.mxu1 %v2190_v29  ;;  %v211_v29 = vpack.c.bf16 %v114_v25, %v106_v24  ;;  %v137_v48 = vld [vmem:[#allocation2 + $0x288] sm:$0xff]  ;;  %v139_v51 = vld [vmem:[#allocation2 + $0x298] sm:$0xff]  ;;  %v136_v54 = vld [vmem:[#allocation2 + $0x280] sm:$0xff] }
  0x45   :  { %v145_v49 = vld [vmem:[#allocation2 + $0x2c8] sm:$0xff]  ;;  %v144_v55 = vld [vmem:[#allocation2 + $0x2c0] sm:$0xff]  ;;  %v138_v56 = vld [vmem:[#allocation2 + $0x290] sm:$0xff] }
  0x46   :  { %1828 = vmatpush3.bf16.msra.mxu0 %v2191_v30  ;;  %v2207_v30 = vld [vmem:[#allocation5 + $0x1d8] sm:$0xff]   ;;  %v226_v50 = vpack.c.bf16 %v145_v49, %v137_v48  ;;  %v2213_v58 = vld [vmem:[#allocation5 + $0x168] sm:$0xff]   ;;  %v160_v7 = vld [vmem:[#allocation2 + $0x340] sm:$0xff] }
  0x47   :  { %1892 = vmatpush3.bf16.msra.mxu1 %v2192_v31  ;;  %1941 = vmatprep.subr.bf16.mxu0 %v2193_v44  ;;  %v2208_v31 = vld [vmem:[#allocation5 + $0x198] sm:$0xff]   ;;  %v217_v44 = vpack.c.bf16 %v128_v39, %v120_v38  ;;  %v161_v0 = vld [vmem:[#allocation2 + $0x348] sm:$0xff]  ;;  %v2217_v8 = vld [vmem:[#allocation5 + $0x170] sm:$0xff]  }
  0x48   :  { %2005 = vmatprep.subr.bf16.mxu1 %v2195_v46  ;;  %v155_v1 = vld [vmem:[#allocation2 + $0x318] sm:$0xff]  ;;  %v154_v9 = vld [vmem:[#allocation2 + $0x310] sm:$0xff]  ;;  %v60_v38 = vld [vmem:[#allocation2 + $0x20] sm:$0xff] }
  0x49   :  { %800 = vmatmul.mubr.bf16.vlgmr.msra.gmra.mrb[0].mxu0 %v185_v40  ;;  %v122_v40 = vld [vmem:[#allocation2 + $0x210] sm:$0xff]  ;;  %v163_v4 = vld [vmem:[#allocation2 + $0x358] sm:$0xff]  ;;  %v68_v39 = vld [vmem:[#allocation2 + $0x60] sm:$0xff] }
  0x4a   :  { %897 = vmatmul.mubr.bf16.vlgmr.msra.gmra.mrb[0].mxu1 %v187_v43  ;;  %1942 = vmatpush3.bf16.msra.mxu0 %v2194_v45  ;;  %v2210_v43 = vld [vmem:[#allocation5 + $0x120] sm:$0xff]   ;;  %v219_v46 = vpack.c.bf16 %v130_v41, %v122_v40  ;;  %v236_v5 = vpack.c.bf16 %v163_v4, %v155_v1  ;;  %v171_v16 = vld [vmem:[#allocation2 + $0x398] sm:$0xff]  ;;  %v62_v40 = vld [vmem:[#allocation2 + $0x30] sm:$0xff] }
  0x4b   :  { %2006 = vmatpush3.bf16.msra.mxu1 %v2196_v47  ;;  %807 = vmatprep.mubr.bf16.mxu0 %v194_v52  ;;  %v2211_v45 = vld [vmem:[#allocation5 + $0x1e0] sm:$0xff]   ;;  %v147_v52 = vld [vmem:[#allocation2 + $0x2d8] sm:$0xff]  ;;  %v70_v41 = vld [vmem:[#allocation2 + $0x70] sm:$0xff] }
  0x4c   :  { %904 = vmatprep.mubr.bf16.mxu1 %v196_v53  ;;  %1943 = vmatprep.subr.bf16.mxu0 %v2197_v60  ;;  %v2212_v47 = vld [vmem:[#allocation5 + $0x1a0] sm:$0xff]   ;;  %v228_v53 = vpack.c.bf16 %v147_v52, %v139_v51  ;;  %v2215_v60 = vld [vmem:[#allocation5 + $0x1e8] sm:$0xff]   ;;  %v179_v17 = vld [vmem:[#allocation2 + $0x3d8] sm:$0xff] }
  0x4d   :  { %2007 = vmatprep.subr.bf16.mxu1 %v2199_v62  ;;  %v225_v62 = vpack.c.bf16 %v144_v55, %v136_v54  ;;  %v244_v21 = vpack.c.bf16 %v179_v17, %v171_v16  ;;  %v2221_v22 = vld [vmem:[#allocation5 + $0x178] sm:$0xff]   ;;  %v84_v51 = vld [vmem:[#allocation2 + $0xe0] sm:$0xff]  ;;  %v78_v52 = vld [vmem:[#allocation2 + $0xb0] sm:$0xff] }
  0x4e   :  { %1944 = vmatpush3.bf16.msra.mxu0 %v2198_v61  ;;  %v2216_v61 = vld [vmem:[#allocation5 + $0x1a8] sm:$0xff]   ;;  %v2222_v24 = vld [vmem:[#allocation5 + $0x138] sm:$0xff]   ;;  %v102_v1 = vld [vmem:[#allocation2 + $0x170] sm:$0xff] }
  0x4f   :  { %2008 = vmatpush3.bf16.msra.mxu1 %v2200_v63  ;;  %1945 = vmatprep.subr.bf16.mxu0 %v2201_v11  ;;  %v153_v63 = vld [vmem:[#allocation2 + $0x308] sm:$0xff]  ;;  %v2218_v11 = vld [vmem:[#allocation5 + $0x130] sm:$0xff]   ;;  %v2223_v25 = vld [vmem:[#allocation5 + $0x1f8] sm:$0xff]  }
  0x50   :  { %2009 = vmatprep.subr.bf16.mxu1 %v2203_v14  ;;  %v234_v3 = vpack.c.bf16 %v161_v0, %v153_v63  ;;  %v169_v14 = vld [vmem:[#allocation2 + $0x388] sm:$0xff]  ;;  %v63_v32 = vld [vmem:[#allocation2 + $0x38] sm:$0xff]  ;;  %v100_v63 = vld [vmem:[#allocation2 + $0x160] sm:$0xff] }
  0x51   :  { %808 = vmatmul.mubr.bf16.gmra.mrb[4].mxu0 %v193_v57  ;;  %v146_v57 = vld [vmem:[#allocation2 + $0x2d0] sm:$0xff]  ;;  %v71_v33 = vld [vmem:[#allocation2 + $0x78] sm:$0xff]  ;;  %v93_v54 = vld [vmem:[#allocation2 + $0x128] sm:$0xff] }
  0x52   :  { %905 = vmatmul.mubr.bf16.gmra.mrb[4].mxu1 %v195_v59  ;;  %815 = vmatprep.mubr.bf16.mxu0 %v202_v2  ;;  %v2214_v59 = vld [vmem:[#allocation5 + $0x128] sm:$0xff]   ;;  %v227_v2 = vpack.c.bf16 %v146_v57, %v138_v56  ;;  %v95_v56 = vld [vmem:[#allocation2 + $0x138] sm:$0xff]  ;;  %v94_v0 = vld [vmem:[#allocation2 + $0x130] sm:$0xff] }
  0x53   :  { %912 = vmatprep.mubr.bf16.mxu1 %v204_v6  ;;  %1946 = vmatpush3.bf16.msra.mxu0 %v2202_v13  ;;  %v152_v6 = vld [vmem:[#allocation2 + $0x300] sm:$0xff]  ;;  %v2220_v13 = vld [vmem:[#allocation5 + $0x1b0] sm:$0xff]   ;;  %v101_v55 = vld [vmem:[#allocation2 + $0x168] sm:$0xff] }
  0x54   :  { %2010 = vmatpush3.bf16.msra.mxu1 %v2204_v15  ;;  %1947 = vmatprep.subr.bf16.mxu0 %v2205_v26  ;;  %v177_v15 = vld [vmem:[#allocation2 + $0x3c8] sm:$0xff]  ;;  %v233_v18 = vpack.c.bf16 %v160_v7, %v152_v6  ;;  %v176_v26 = vld [vmem:[#allocation2 + $0x3c0] sm:$0xff]  ;;  %v103_v57 = vld [vmem:[#allocation2 + $0x178] sm:$0xff]  ;;  %v207_v7 = vpack.c.bf16 %v102_v1, %v94_v0 }
  0x55   :  { %2011 = vmatprep.subr.bf16.mxu1 %v2207_v30  ;;  %v242_v20 = vpack.c.bf16 %v177_v15, %v169_v14  ;;  %v61_v30 = vld [vmem:[#allocation2 + $0x28] sm:$0xff]  ;;  %v111_v4 = vld [vmem:[#allocation2 + $0x1b8] sm:$0xff]  ;;  %v2225_v0 = vld [vmem:[%s2675_s3] sm:$0xff]  }
  0x56   :  { %v125_v14 = vld [vmem:[#allocation2 + $0x228] sm:$0xff]  ;;  %v127_v16 = vld [vmem:[#allocation2 + $0x238] sm:$0xff] }
  0x57   :  { %1948 = vmatpush3.bf16.msra.mxu0 %v2206_v28  ;;  %v2224_v28 = vld [vmem:[#allocation5 + $0x1b8] sm:$0xff]   ;;  %v133_v15 = vld [vmem:[#allocation2 + $0x268] sm:$0xff] }
  0x58   :  { %2012 = vmatpush3.bf16.msra.mxu1 %v2208_v31  ;;  %1949 = vmatprep.subr.bf16.mxu0 %v2209_v42  ;;  %v69_v31 = vld [vmem:[#allocation2 + $0x68] sm:$0xff]  ;;  %v135_v17 = vld [vmem:[#allocation2 + $0x278] sm:$0xff] }
  0x59   :  { %816 = vmatmul.mubr.bf16.gmra.mrb[8].mxu0 %v201_v10  ;;  %2013 = vmatprep.subr.bf16.mxu1 %v2211_v45  ;;  %v162_v10 = vld [vmem:[#allocation2 + $0x350] sm:$0xff]  ;;  %v77_v42 = vld [vmem:[#allocation2 + $0xa8] sm:$0xff]  ;;  %v87_v45 = vld [vmem:[#allocation2 + $0xf8] sm:$0xff] }
  0x5a   :  { %913 = vmatmul.mubr.bf16.gmra.mrb[8].mxu1 %v203_v12  ;;  %823 = vmatprep.mubr.bf16.mxu0 %v210_v19  ;;  %v2219_v12 = vld [vmem:[#allocation5 + $0x1f0] sm:$0xff]   ;;  %v235_v19 = vpack.c.bf16 %v162_v10, %v154_v9  ;;  %v108_v10 = vld [vmem:[#allocation2 + $0x1a0] sm:$0xff]  ;;  %v2226_v1 = vld [vmem:[%s2675_s3 + $0x8] sm:$0xff]  }
  0x5b   :  { %920 = vmatprep.mubr.bf16.mxu1 %v212_v23  ;;  %1950 = vmatpush3.bf16.msra.mxu0 %v2210_v43  ;;  %v168_v23 = vld [vmem:[#allocation2 + $0x380] sm:$0xff]  ;;  %v85_v43 = vld [vmem:[#allocation2 + $0xe8] sm:$0xff] }
  0x5c   :  { %2014 = vmatpush3.bf16.msra.mxu1 %v2212_v47  ;;  %1951 = vmatprep.subr.bf16.mxu0 %v2213_v58  ;;  %v241_v34 = vpack.c.bf16 %v176_v26, %v168_v23  ;;  %v191_v47 = vpack.c.bf16 %v70_v41, %v62_v40  ;;  %v198_v48 = vpack.c.bf16 %v85_v43, %v77_v42  ;;  %v132_v23 = vld [vmem:[#allocation2 + $0x260] sm:$0xff]  ;;  %v141_v26 = vld [vmem:[#allocation2 + $0x2a8] sm:$0xff]  ;;  %v159_v40 = vld [vmem:[#allocation2 + $0x338] sm:$0xff] }
  0x5d   :  { %2015 = vmatprep.subr.bf16.mxu1 %v2215_v60  ;;  %v206_v60 = vpack.c.bf16 %v101_v55, %v93_v54  ;;  %v167_v41 = vld [vmem:[#allocation2 + $0x378] sm:$0xff] }
  0x5f   :  { %1952 = vmatpush3.bf16.msra.mxu0 %v2214_v59 }
  0x60   :  { %2016 = vmatpush3.bf16.msra.mxu1 %v2216_v61  ;;  %1953 = vmatprep.subr.bf16.mxu0 %v2217_v8  ;;  %v208_v61 = vpack.c.bf16 %v103_v57, %v95_v56 }
  0x61   :  { %824 = vmatmul.mubr.bf16.gmra.mrb[12].mxu0 %v209_v27  ;;  %2017 = vmatprep.subr.bf16.mxu1 %v2219_v12  ;;  %v170_v27 = vld [vmem:[#allocation2 + $0x390] sm:$0xff] }
  0x62   :  { %921 = vmatmul.mubr.bf16.gmra.mrb[12].mxu1 %v211_v29  ;;  %831 = vmatprep.mubr.bf16.mxu0 %v218_v36  ;;  %v178_v29 = vld [vmem:[#allocation2 + $0x3d0] sm:$0xff]  ;;  %v190_v36 = vpack.c.bf16 %v69_v31, %v61_v30 }
  0x63   :  { %928 = vmatprep.mubr.bf16.mxu1 %v220_v37  ;;  %1954 = vmatpush3.bf16.msra.mxu0 %v2218_v11  ;;  %v243_v35 = vpack.c.bf16 %v178_v29, %v170_v27  ;;  %v192_v37 = vpack.c.bf16 %v71_v33, %v63_v32  ;;  %v116_v11 = vld [vmem:[#allocation2 + $0x1e0] sm:$0xff]  ;;  %v110_v12 = vld [vmem:[#allocation2 + $0x1b0] sm:$0xff]  ;;  %v149_v27 = vld [vmem:[#allocation2 + $0x2e8] sm:$0xff] }
  0x64   :  { %2018 = vmatpush3.bf16.msra.mxu1 %v2220_v13  ;;  %1955 = vmatprep.subr.bf16.mxu0 %v2221_v22  ;;  %v118_v13 = vld [vmem:[#allocation2 + $0x1f0] sm:$0xff]  ;;  %v124_v22 = vld [vmem:[#allocation2 + $0x220] sm:$0xff]  ;;  %v151_v29 = vld [vmem:[#allocation2 + $0x2f8] sm:$0xff]  ;;  %v230_v32 = vpack.c.bf16 %v149_v27, %v141_v26 }
  0x65   :  { %2019 = vmatprep.subr.bf16.mxu1 %v2223_v25  ;;  %v134_v25 = vld [vmem:[#allocation2 + $0x270] sm:$0xff]  ;;  %v221_v30 = vpack.c.bf16 %v132_v23, %v124_v22 }
  0x67   :  { %1956 = vmatpush3.bf16.msra.mxu0 %v2222_v24  ;;  %v126_v24 = vld [vmem:[#allocation2 + $0x230] sm:$0xff] }
  0x68   :  { %2020 = vmatpush3.bf16.msra.mxu1 %v2224_v28  ;;  %v143_v28 = vld [vmem:[#allocation2 + $0x2b8] sm:$0xff]  ;;  %v223_v31 = vpack.c.bf16 %v134_v25, %v126_v24  ;;  %2097 = vmatprep.subr.bf16.mxu0 %v2225_v0  ;;  %v2233_v24 = vld [vmem:[%s2677_s5] sm:$0xff]   ;;  %v2234_v25 = vld [vmem:[%s2677_s5 + $0x8] sm:$0xff]  }
  0x69   :  { %832 = vmatmul.mubr.bf16.gmra.mrb[16].mxu0 %v217_v44  ;;  %v79_v44 = vld [vmem:[#allocation2 + $0xb8] sm:$0xff]  ;;  %v232_v33 = vpack.c.bf16 %v151_v29, %v143_v28  ;;  %2129 = vmatprep.subr.bf16.mxu1 %v2233_v24 }
  0x6a   :  { %929 = vmatmul.mubr.bf16.gmra.mrb[16].mxu1 %v219_v46  ;;  %839 = vmatprep.mubr.bf16.mxu0 %v226_v50  ;;  %v189_v46 = vpack.c.bf16 %v68_v39, %v60_v38  ;;  %v200_v49 = vpack.c.bf16 %v87_v45, %v79_v44  ;;  %v76_v50 = vld [vmem:[#allocation2 + $0xa0] sm:$0xff]  ;;  %v157_v38 = vld [vmem:[#allocation2 + $0x328] sm:$0xff]  ;;  %v240_v45 = vpack.c.bf16 %v167_v41, %v159_v40 }
  0x6b   :  { %936 = vmatprep.mubr.bf16.mxu1 %v228_v53  ;;  %v86_v53 = vld [vmem:[#allocation2 + $0xf0] sm:$0xff]  ;;  %v197_v58 = vpack.c.bf16 %v84_v51, %v76_v50  ;;  %v165_v39 = vld [vmem:[#allocation2 + $0x368] sm:$0xff] }
  0x6c   :  { %v199_v59 = vpack.c.bf16 %v86_v53, %v78_v52  ;;  %v238_v44 = vpack.c.bf16 %v165_v39, %v157_v38  ;;  %v173_v50 = vld [vmem:[#allocation2 + $0x3a8] sm:$0xff]  ;;  %v175_v52 = vld [vmem:[#allocation2 + $0x3b8] sm:$0xff] }
  0x6d   :  { %v181_v51 = vld [vmem:[#allocation2 + $0x3e8] sm:$0xff]  ;;  %v183_v53 = vld [vmem:[#allocation2 + $0x3f8] sm:$0xff] }
  0x6e   :  { %v246_v56 = vpack.c.bf16 %v181_v51, %v173_v50  ;;  %v248_v57 = vpack.c.bf16 %v183_v53, %v175_v52 }
  0x71   :  { %840 = vmatmul.mubr.bf16.gmra.mrb[20].mxu0 %v225_v62  ;;  %v92_v62 = vld [vmem:[#allocation2 + $0x120] sm:$0xff] }
  0x72   :  { %937 = vmatmul.mubr.bf16.gmra.mrb[20].mxu1 %v227_v2  ;;  %847 = vmatprep.mubr.bf16.mxu0 %v234_v3  ;;  %v109_v2 = vld [vmem:[#allocation2 + $0x1a8] sm:$0xff]  ;;  %v205_v6 = vpack.c.bf16 %v100_v63, %v92_v62 }
  0x73   :  { %944 = vmatprep.mubr.bf16.mxu1 %v236_v5  ;;  %v117_v3 = vld [vmem:[#allocation2 + $0x1e8] sm:$0xff]  ;;  %v119_v5 = vld [vmem:[#allocation2 + $0x1f8] sm:$0xff] }
  0x74   :  { %v214_v8 = vpack.c.bf16 %v117_v3, %v109_v2  ;;  %v216_v9 = vpack.c.bf16 %v119_v5, %v111_v4  ;;  %v2227_v2 = vld [vmem:[%s2675_s3 + $0x10] sm:$0xff]   ;;  %v2228_v3 = vld [vmem:[%s2675_s3 + $0x18] sm:$0xff]   ;;  %v2229_v4 = vld [vmem:[%s2675_s3 + $0x20] sm:$0xff]  }
  0x75   :  { %v2230_v5 = vld [vmem:[%s2675_s3 + $0x28] sm:$0xff]  }
  0x79   :  { %848 = vmatmul.mubr.bf16.gmra.mrb[24].mxu0 %v233_v18  ;;  %v213_v18 = vpack.c.bf16 %v116_v11, %v108_v10  ;;  %v2472_v10 = vld [vmem:[%s2674_s2] ss:$0 sm:$0xff] }
  0x7a   :  { %945 = vmatmul.mubr.bf16.gmra.mrb[24].mxu1 %v235_v19  ;;  %855 = vmatprep.mubr.bf16.mxu0 %v242_v20  ;;  %v215_v19 = vpack.c.bf16 %v118_v13, %v110_v12  ;;  %v222_v20 = vpack.c.bf16 %v133_v15, %v125_v14 }
  0x7b   :  { %952 = vmatprep.mubr.bf16.mxu1 %v244_v21  ;;  %v224_v21 = vpack.c.bf16 %v135_v17, %v127_v16 }
  0x81   :  { %856 = vmatmul.mubr.bf16.gmra.mrb[28].mxu0 %v241_v34  ;;  %v140_v34 = vld [vmem:[#allocation2 + $0x2a0] sm:$0xff] }
  0x82   :  { %953 = vmatmul.mubr.bf16.gmra.mrb[28].mxu1 %v243_v35  ;;  %993 = vmatprep.mubr.bf16.mxu0 %v190_v36  ;;  %v148_v35 = vld [vmem:[#allocation2 + $0x2e0] sm:$0xff]  ;;  %v142_v36 = vld [vmem:[#allocation2 + $0x2b0] sm:$0xff] }
  0x83   :  { %1090 = vmatprep.mubr.bf16.mxu1 %v192_v37  ;;  %v150_v37 = vld [vmem:[#allocation2 + $0x2f0] sm:$0xff]  ;;  %v229_v42 = vpack.c.bf16 %v148_v35, %v140_v34 }
  0x84   :  { %v231_v43 = vpack.c.bf16 %v150_v37, %v142_v36 }
  0x89   :  { %994 = vmatmul.mubr.bf16.vlgmr.msra.gmra.mrb[32].mxu0 %v189_v46  ;;  %v156_v46 = vld [vmem:[#allocation2 + $0x320] sm:$0xff] }
  0x8a   :  { %1091 = vmatmul.mubr.bf16.vlgmr.msra.gmra.mrb[32].mxu1 %v191_v47  ;;  %1001 = vmatprep.mubr.bf16.mxu0 %v198_v48  ;;  %v164_v47 = vld [vmem:[#allocation2 + $0x360] sm:$0xff]  ;;  %v158_v48 = vld [vmem:[#allocation2 + $0x330] sm:$0xff] }
  0x8b   :  { %1098 = vmatprep.mubr.bf16.mxu1 %v200_v49  ;;  %v166_v49 = vld [vmem:[#allocation2 + $0x370] sm:$0xff]  ;;  %v237_v54 = vpack.c.bf16 %v164_v47, %v156_v46  ;;  %2098 = vmatpush3.bf16.msra.mxu0 %v2225_v0 }
  0x8c   :  { %v239_v55 = vpack.c.bf16 %v166_v49, %v158_v48  ;;  %2099 = vmatprep.subr.bf16.mxu0 %v2226_v1  ;;  %2130 = vmatpush3.bf16.msra.mxu1 %v2233_v24 }
  0x8d   :  { %2131 = vmatprep.subr.bf16.mxu1 %v2234_v25 }
  0x8f   :  { %2100 = vmatpush3.bf16.msra.mxu0 %v2226_v1 }
  0x90   :  { %2101 = vmatprep.subr.bf16.mxu0 %v2227_v2  ;;  %2132 = vmatpush3.bf16.msra.mxu1 %v2234_v25 }
  0x91   :  { %1002 = vmatmul.mubr.bf16.gmra.mrb[36].mxu0 %v197_v58  ;;  %v172_v58 = vld [vmem:[#allocation2 + $0x3a0] sm:$0xff] }
  0x92   :  { %1099 = vmatmul.mubr.bf16.gmra.mrb[36].mxu1 %v199_v59  ;;  %1009 = vmatprep.mubr.bf16.mxu0 %v206_v60  ;;  %v180_v59 = vld [vmem:[#allocation2 + $0x3e0] sm:$0xff]  ;;  %v174_v60 = vld [vmem:[#allocation2 + $0x3b0] sm:$0xff] }
  0x93   :  { %1106 = vmatprep.mubr.bf16.mxu1 %v208_v61  ;;  %v182_v61 = vld [vmem:[#allocation2 + $0x3f0] sm:$0xff]  ;;  %v245_v62 = vpack.c.bf16 %v180_v59, %v172_v58  ;;  %2102 = vmatpush3.bf16.msra.mxu0 %v2227_v2 }
  0x94   :  { %v247_v63 = vpack.c.bf16 %v182_v61, %v174_v60  ;;  %2103 = vmatprep.subr.bf16.mxu0 %v2228_v3 }
  0x97   :  { %2104 = vmatpush3.bf16.msra.mxu0 %v2228_v3 }
  0x98   :  { %2105 = vmatprep.subr.bf16.mxu0 %v2229_v4 }
  0x99   :  { %1010 = vmatmul.mubr.bf16.gmra.mrb[40].mxu0 %v205_v6  ;;  %v2231_v6 = vld [vmem:[%s2675_s3 + $0x30] sm:$0xff]  }
  0x9a   :  { %1107 = vmatmul.mubr.bf16.gmra.mrb[40].mxu1 %v207_v7  ;;  %1017 = vmatprep.mubr.bf16.mxu0 %v214_v8  ;;  %v2232_v7 = vld [vmem:[%s2675_s3 + $0x38] sm:$0xff]  }
  0x9b   :  { %1114 = vmatprep.mubr.bf16.mxu1 %v216_v9  ;;  %2106 = vmatpush3.bf16.msra.mxu0 %v2229_v4 }
  0x9c   :  { %2107 = vmatprep.subr.bf16.mxu0 %v2230_v5 }
  0x9f   :  { %2108 = vmatpush3.bf16.msra.mxu0 %v2230_v5 }
  0xa0   :  { %2109 = vmatprep.subr.bf16.mxu0 %v2231_v6 }
  0xa1   :  { %1018 = vmatmul.mubr.bf16.gmra.mrb[44].mxu0 %v213_v18 }
  0xa2   :  { %1115 = vmatmul.mubr.bf16.gmra.mrb[44].mxu1 %v215_v19  ;;  %1025 = vmatprep.mubr.bf16.mxu0 %v222_v20 }
  0xa3   :  { %1122 = vmatprep.mubr.bf16.mxu1 %v224_v21  ;;  %2110 = vmatpush3.bf16.msra.mxu0 %v2231_v6 }
  0xa4   :  { %2111 = vmatprep.subr.bf16.mxu0 %v2232_v7 }
  0xa7   :  { %2112 = vmatpush3.bf16.msra.mxu0 %v2232_v7 }
  0xa9   :  { %1026 = vmatmul.mubr.bf16.gmra.mrb[48].mxu0 %v221_v30 }
  0xaa   :  { %1123 = vmatmul.mubr.bf16.gmra.mrb[48].mxu1 %v223_v31  ;;  %1033 = vmatprep.mubr.bf16.mxu0 %v230_v32 }
  0xab   :  { %1130 = vmatprep.mubr.bf16.mxu1 %v232_v33 }
  0xb1   :  { %1034 = vmatmul.mubr.bf16.gmra.mrb[52].mxu0 %v229_v42 }
  0xb2   :  { %1131 = vmatmul.mubr.bf16.gmra.mrb[52].mxu1 %v231_v43  ;;  %1041 = vmatprep.mubr.bf16.mxu0 %v238_v44 }
  0xb3   :  { %1138 = vmatprep.mubr.bf16.mxu1 %v240_v45 }
  0xb9   :  { %1042 = vmatmul.mubr.bf16.gmra.mrb[56].mxu0 %v237_v54 }
  0xba   :  { %1139 = vmatmul.mubr.bf16.gmra.mrb[56].mxu1 %v239_v55  ;;  %1049 = vmatprep.mubr.bf16.mxu0 %v246_v56 }
  0xbb   :  { %1146 = vmatprep.mubr.bf16.mxu1 %v248_v57 }
  0xc1   :  { %1050 = vmatmul.mubr.bf16.gmra.mrb[60].mxu0 %v245_v62 }
  0xc2   :  { %1147 = vmatmul.mubr.bf16.gmra.mrb[60].mxu1 %v247_v63 }
 0x11c   :  { %v1829_v8 = vpop.f32.mrb[0].mxu0 }
 0x11d   :  { %v1893_v9 = vpop.f32.mrb[0].mxu1  ;;  %v1830_v11 = vpop.f32.mrb[1].mxu0 }
 0x11e   :  { %v1831_v12 = vadd.f32 %v1830_v11, %v1829_v8  ;;  %v1894_v13 = vpop.f32.mrb[1].mxu1  ;;  %v1832_v14 = vpop.f32.mrb[2].mxu0 }
 0x11f   :  { %v1895_v15 = vadd.f32 %v1894_v13, %v1893_v9  ;;  %v1896_v16 = vpop.f32.mrb[2].mxu1  ;;  %v1833_v17 = vpop.f32.mrb[3].mxu0 }
 0x120   :  { %v802_v18 = vadd.f32 %v1831_v12, %v2472_v10  ;;  %v1834_v19 = vadd.f32 %v1833_v17, %v1832_v14  ;;  %v1897_v20 = vpop.f32.mrb[3].mxu1 }
 0x121   :  { %v1898_v21 = vadd.f32 %v1897_v20, %v1896_v16 }
 0x122   :  { %v2475_v22 = vadd.f32 %v1895_v15, %v802_v18  ;;  %v805_v23 = vadd.f32 %v1834_v19, %v2472_v10 }
 0x124   :  { %v2484_v26 = vadd.f32 %v1898_v21, %v805_v23  ;;  %v1835_v27 = vpop.f32.mrb[4].mxu0 }
 0x125   :  { %v1899_v28 = vpop.f32.mrb[4].mxu1  ;;  %v1836_v29 = vpop.f32.mrb[5].mxu0 }
 0x126   :  { %v1837_v30 = vadd.f32 %v1836_v29, %v1835_v27  ;;  %v1900_v31 = vpop.f32.mrb[5].mxu1  ;;  %v1838_v32 = vpop.f32.mrb[6].mxu0 }
 0x127   :  { %v1901_v33 = vadd.f32 %v1900_v31, %v1899_v28  ;;  %v1902_v34 = vpop.f32.mrb[6].mxu1  ;;  %v1839_v35 = vpop.f32.mrb[7].mxu0 }
 0x128   :  { %v810_v36 = vadd.f32 %v1837_v30, %v2472_v10  ;;  %v1840_v37 = vadd.f32 %v1839_v35, %v1838_v32  ;;  %v1903_v38 = vpop.f32.mrb[7].mxu1 }
 0x129   :  { %v1904_v39 = vadd.f32 %v1903_v38, %v1902_v34 }
 0x12a   :  { %v2487_v40 = vadd.f32 %v1901_v33, %v810_v36  ;;  %v813_v41 = vadd.f32 %v1840_v37, %v2472_v10 }
 0x12c   :  { %v2490_v42 = vadd.f32 %v1904_v39, %v813_v41  ;;  %v1841_v43 = vpop.f32.mrb[8].mxu0 }
 0x12d   :  { %v1905_v44 = vpop.f32.mrb[8].mxu1  ;;  %v1842_v45 = vpop.f32.mrb[9].mxu0 }
 0x12e   :  { %v1843_v46 = vadd.f32 %v1842_v45, %v1841_v43  ;;  %v1906_v47 = vpop.f32.mrb[9].mxu1  ;;  %v1844_v48 = vpop.f32.mrb[10].mxu0 }
 0x12f   :  { %v1907_v49 = vadd.f32 %v1906_v47, %v1905_v44  ;;  %v1908_v50 = vpop.f32.mrb[10].mxu1  ;;  %v1845_v51 = vpop.f32.mrb[11].mxu0 }
 0x130   :  { %v818_v52 = vadd.f32 %v1843_v46, %v2472_v10  ;;  %v1846_v53 = vadd.f32 %v1845_v51, %v1844_v48  ;;  %v1909_v54 = vpop.f32.mrb[11].mxu1 }
 0x131   :  { %v1910_v55 = vadd.f32 %v1909_v54, %v1908_v50 }
 0x132   :  { %v2493_v56 = vadd.f32 %v1907_v49, %v818_v52  ;;  %v821_v57 = vadd.f32 %v1846_v53, %v2472_v10 }
 0x134   :  { %v2496_v58 = vadd.f32 %v1910_v55, %v821_v57  ;;  %v1847_v59 = vpop.f32.mrb[12].mxu0 }
 0x135   :  { %v1911_v60 = vpop.f32.mrb[12].mxu1  ;;  %v1848_v61 = vpop.f32.mrb[13].mxu0 }
 0x136   :  { %v1849_v62 = vadd.f32 %v1848_v61, %v1847_v59  ;;  %v1912_v63 = vpop.f32.mrb[13].mxu1  ;;  %v1850_v0 = vpop.f32.mrb[14].mxu0 }
 0x137   :  { %v1913_v1 = vadd.f32 %v1912_v63, %v1911_v60  ;;  %v1914_v2 = vpop.f32.mrb[14].mxu1  ;;  %v1851_v3 = vpop.f32.mrb[15].mxu0 }
 0x138   :  { %v826_v4 = vadd.f32 %v1849_v62, %v2472_v10  ;;  %v1852_v5 = vadd.f32 %v1851_v3, %v1850_v0  ;;  %v1915_v6 = vpop.f32.mrb[15].mxu1 }
 0x139   :  { %v1916_v7 = vadd.f32 %v1915_v6, %v1914_v2 }
 0x13a   :  { %v2499_v8 = vadd.f32 %v1913_v1, %v826_v4  ;;  %v829_v9 = vadd.f32 %v1852_v5, %v2472_v10 }
 0x13c   :  { %v2502_v11 = vadd.f32 %v1916_v7, %v829_v9  ;;  %v1853_v12 = vpop.f32.mrb[16].mxu0 }
 0x13d   :  { %v1917_v13 = vpop.f32.mrb[16].mxu1  ;;  %v1854_v14 = vpop.f32.mrb[17].mxu0 }
 0x13e   :  { %v1855_v15 = vadd.f32 %v1854_v14, %v1853_v12  ;;  %v1918_v16 = vpop.f32.mrb[17].mxu1  ;;  %v1856_v17 = vpop.f32.mrb[18].mxu0 }
 0x13f   :  { %v1919_v18 = vadd.f32 %v1918_v16, %v1917_v13  ;;  %v1920_v19 = vpop.f32.mrb[18].mxu1  ;;  %v1857_v20 = vpop.f32.mrb[19].mxu0 }
 0x140   :  { %v834_v21 = vadd.f32 %v1855_v15, %v2472_v10  ;;  %v1858_v23 = vadd.f32 %v1857_v20, %v1856_v17  ;;  %v1921_v24 = vpop.f32.mrb[19].mxu1 }
 0x141   :  { %v1922_v25 = vadd.f32 %v1921_v24, %v1920_v19 }
 0x142   :  { %v2505_v27 = vadd.f32 %v1919_v18, %v834_v21  ;;  %v837_v28 = vadd.f32 %v1858_v23, %v2472_v10 }
 0x144   :  { %v2508_v29 = vadd.f32 %v1922_v25, %v837_v28  ;;  %v1859_v30 = vpop.f32.mrb[20].mxu0 }
 0x145   :  { %v1923_v31 = vpop.f32.mrb[20].mxu1  ;;  %v1860_v32 = vpop.f32.mrb[21].mxu0 }
 0x146   :  { %v1861_v33 = vadd.f32 %v1860_v32, %v1859_v30  ;;  %v1924_v34 = vpop.f32.mrb[21].mxu1  ;;  %v1862_v35 = vpop.f32.mrb[22].mxu0 }
 0x147   :  { %v1925_v36 = vadd.f32 %v1924_v34, %v1923_v31  ;;  %v1926_v37 = vpop.f32.mrb[22].mxu1  ;;  %v1863_v38 = vpop.f32.mrb[23].mxu0 }
 0x148   :  { %v842_v39 = vadd.f32 %v1861_v33, %v2472_v10  ;;  %v1864_v41 = vadd.f32 %v1863_v38, %v1862_v35  ;;  %v1927_v43 = vpop.f32.mrb[23].mxu1 }
 0x149   :  { %v1928_v44 = vadd.f32 %v1927_v43, %v1926_v37 }
 0x14a   :  { %v2511_v45 = vadd.f32 %v1925_v36, %v842_v39  ;;  %v845_v46 = vadd.f32 %v1864_v41, %v2472_v10 }
 0x14c   :  { %v2514_v47 = vadd.f32 %v1928_v44, %v845_v46  ;;  %v1865_v48 = vpop.f32.mrb[24].mxu0 }
 0x14d   :  { %v1929_v49 = vpop.f32.mrb[24].mxu1  ;;  %v1866_v50 = vpop.f32.mrb[25].mxu0 }
 0x14e   :  { %v1867_v51 = vadd.f32 %v1866_v50, %v1865_v48  ;;  %v1930_v52 = vpop.f32.mrb[25].mxu1  ;;  %v1868_v53 = vpop.f32.mrb[26].mxu0 }
 0x14f   :  { %v1931_v54 = vadd.f32 %v1930_v52, %v1929_v49  ;;  %v1932_v55 = vpop.f32.mrb[26].mxu1  ;;  %v1869_v57 = vpop.f32.mrb[27].mxu0 }
 0x150   :  { %v850_v59 = vadd.f32 %v1867_v51, %v2472_v10  ;;  %v1870_v60 = vadd.f32 %v1869_v57, %v1868_v53  ;;  %v1933_v61 = vpop.f32.mrb[27].mxu1 }
 0x151   :  { %v1934_v62 = vadd.f32 %v1933_v61, %v1932_v55 }
 0x152   :  { %v2517_v63 = vadd.f32 %v1931_v54, %v850_v59  ;;  %v853_v0 = vadd.f32 %v1870_v60, %v2472_v10 }
 0x154   :  { %v2520_v1 = vadd.f32 %v1934_v62, %v853_v0  ;;  %v1871_v2 = vpop.f32.mrb[28].mxu0 }
 0x155   :  { %v1935_v3 = vpop.f32.mrb[28].mxu1  ;;  %v1872_v4 = vpop.f32.mrb[29].mxu0 }
 0x156   :  { %v1873_v5 = vadd.f32 %v1872_v4, %v1871_v2  ;;  %v1936_v6 = vpop.f32.mrb[29].mxu1  ;;  %v1874_v7 = vpop.f32.mrb[30].mxu0 }
 0x157   :  { %v1937_v9 = vadd.f32 %v1936_v6, %v1935_v3  ;;  %v1938_v12 = vpop.f32.mrb[30].mxu1  ;;  %v1875_v13 = vpop.f32.mrb[31].mxu0 }
 0x158   :  { %v858_v14 = vadd.f32 %v1873_v5, %v2472_v10  ;;  %v1876_v15 = vadd.f32 %v1875_v13, %v1874_v7  ;;  %v1939_v16 = vpop.f32.mrb[31].mxu1 }
 0x159   :  { %v1940_v17 = vadd.f32 %v1939_v16, %v1938_v12 }
 0x15a   :  { %v2523_v18 = vadd.f32 %v1937_v9, %v858_v14  ;;  %v861_v19 = vadd.f32 %v1876_v15, %v2472_v10 }
 0x15c   :  { %v2526_v20 = vadd.f32 %v1940_v17, %v861_v19  ;;  %v1957_v21 = vpop.f32.mrb[32].mxu0 }
 0x15d   :  { %v2021_v23 = vpop.f32.mrb[32].mxu1  ;;  %v1958_v24 = vpop.f32.mrb[33].mxu0 }
 0x15e   :  { %v1959_v25 = vadd.f32 %v1958_v24, %v1957_v21  ;;  %v2022_v28 = vpop.f32.mrb[33].mxu1  ;;  %v1960_v30 = vpop.f32.mrb[34].mxu0 }
 0x15f   :  { %v2023_v31 = vadd.f32 %v2022_v28, %v2021_v23  ;;  %v2024_v32 = vpop.f32.mrb[34].mxu1  ;;  %v1961_v33 = vpop.f32.mrb[35].mxu0 }
 0x160   :  { %v996_v34 = vadd.f32 %v1959_v25, %v2475_v22  ;;  %v1962_v35 = vadd.f32 %v1961_v33, %v1960_v30  ;;  %v2025_v36 = vpop.f32.mrb[35].mxu1 }
 0x161   :  { %v2026_v37 = vadd.f32 %v2025_v36, %v2024_v32 }
 0x162   :  { %v1093_v38 = vadd.f32 %v2023_v31, %v996_v34  ;;  %v999_v39 = vadd.f32 %v1962_v35, %v2484_v26 }
 0x164   :  { %v1096_v10 = vadd.f32 %v2026_v37, %v999_v39  ;;  %v1963_v41 = vpop.f32.mrb[36].mxu0  ;;  %v1155_v46 = vmax.f32 %v1093_v38, 0.0 }
 0x165   :  { %v2027_v43 = vpop.f32.mrb[36].mxu1  ;;  %v1964_v44 = vpop.f32.mrb[37].mxu0 }
 0x166   :  { %v1156_v48 = vmax.f32 %v1096_v10, 0.0  ;;  %v1965_v49 = vadd.f32 %v1964_v44, %v1963_v41  ;;  %v2028_v50 = vpop.f32.mrb[37].mxu1  ;;  %v1966_v51 = vpop.f32.mrb[38].mxu0 }
 0x167   :  { %v2029_v52 = vadd.f32 %v2028_v50, %v2027_v43  ;;  %v2030_v53 = vpop.f32.mrb[38].mxu1  ;;  %v1967_v54 = vpop.f32.mrb[39].mxu0 }
 0x168   :  { %v1004_v22 = vadd.f32 %v1965_v49, %v2487_v40  ;;  %v1968_v55 = vadd.f32 %v1967_v54, %v1966_v51  ;;  %v2031_v57 = vpop.f32.mrb[39].mxu1  ;;  %v1172_v59 = vpack.c.bf16 %v1156_v48, %v1155_v46 }
 0x169   :  { %v2032_v60 = vadd.f32 %v2031_v57, %v2030_v53 }
 0x16a   :  { %v1101_v61 = vadd.f32 %v2029_v52, %v1004_v22  ;;  %v1007_v26 = vadd.f32 %v1968_v55, %v2490_v42  ;;  %2113 = vmatprep.mubr.bf16.mxu0 %v1172_v59 }
 0x16c   :  { %v1104_v62 = vadd.f32 %v2032_v60, %v1007_v26  ;;  %v1969_v0 = vpop.f32.mrb[40].mxu0  ;;  %v1157_v4 = vmax.f32 %v1101_v61, 0.0 }
 0x16d   :  { %v2033_v2 = vpop.f32.mrb[40].mxu1  ;;  %v1970_v3 = vpop.f32.mrb[41].mxu0 }
 0x16e   :  { %v1158_v5 = vmax.f32 %v1104_v62, 0.0  ;;  %v1971_v6 = vadd.f32 %v1970_v3, %v1969_v0  ;;  %v2034_v7 = vpop.f32.mrb[41].mxu1  ;;  %v1972_v9 = vpop.f32.mrb[42].mxu0 }
 0x16f   :  { %v2035_v12 = vadd.f32 %v2034_v7, %v2033_v2  ;;  %v2036_v13 = vpop.f32.mrb[42].mxu1  ;;  %v1973_v40 = vpop.f32.mrb[43].mxu0 }
 0x170   :  { %v1173_v14 = vpack.c.bf16 %v1158_v5, %v1157_v4  ;;  %v1012_v15 = vadd.f32 %v1971_v6, %v2493_v56  ;;  %v1974_v16 = vadd.f32 %v1973_v40, %v1972_v9  ;;  %v2037_v17 = vpop.f32.mrb[43].mxu1 }
 0x171   :  { %v2038_v19 = vadd.f32 %v2037_v17, %v2036_v13 }
 0x172   :  { %v1109_v42 = vadd.f32 %v2035_v12, %v1012_v15  ;;  %v1015_v21 = vadd.f32 %v1974_v16, %v2496_v58  ;;  %2114 = vmatmul.mubr.bf16.vlgmr.msra.gmra.mrb[64].mxu0 %v1173_v14 }
 0x174   :  { %v1112_v23 = vadd.f32 %v2038_v19, %v1015_v21  ;;  %v1975_v24 = vpop.f32.mrb[44].mxu0  ;;  %v1159_v30 = vmax.f32 %v1109_v42, 0.0 }
 0x175   :  { %v2039_v25 = vpop.f32.mrb[44].mxu1  ;;  %v1976_v28 = vpop.f32.mrb[45].mxu0 }
 0x176   :  { %v1160_v31 = vmax.f32 %v1112_v23, 0.0  ;;  %v1977_v32 = vadd.f32 %v1976_v28, %v1975_v24  ;;  %v2040_v33 = vpop.f32.mrb[45].mxu1  ;;  %v1978_v34 = vpop.f32.mrb[46].mxu0 }
 0x177   :  { %v2041_v35 = vadd.f32 %v2040_v33, %v2039_v25  ;;  %v2042_v36 = vpop.f32.mrb[46].mxu1  ;;  %v1979_v37 = vpop.f32.mrb[47].mxu0 }
 0x178   :  { %v1020_v56 = vadd.f32 %v1977_v32, %v2499_v8  ;;  %v1980_v38 = vadd.f32 %v1979_v37, %v1978_v34  ;;  %v2043_v39 = vpop.f32.mrb[47].mxu1  ;;  %v1174_v10 = vpack.c.bf16 %v1160_v31, %v1159_v30 }
 0x179   :  { %v2044_v41 = vadd.f32 %v2043_v39, %v2042_v36 }
 0x17a   :  { %v1117_v58 = vadd.f32 %v2041_v35, %v1020_v56  ;;  %v1023_v43 = vadd.f32 %v1980_v38, %v2502_v11  ;;  %2117 = vmatprep.mubr.bf16.mxu0 %v1174_v10 }
 0x17c   :  { %v1120_v44 = vadd.f32 %v2044_v41, %v1023_v43  ;;  %v1981_v46 = vpop.f32.mrb[48].mxu0  ;;  %v1161_v50 = vmax.f32 %v1117_v58, 0.0 }
 0x17d   :  { %v2045_v48 = vpop.f32.mrb[48].mxu1  ;;  %v1982_v49 = vpop.f32.mrb[49].mxu0 }
 0x17e   :  { %v1162_v51 = vmax.f32 %v1120_v44, 0.0  ;;  %v1983_v52 = vadd.f32 %v1982_v49, %v1981_v46  ;;  %v2046_v53 = vpop.f32.mrb[49].mxu1  ;;  %v1984_v54 = vpop.f32.mrb[50].mxu0 }
 0x17f   :  { %v2047_v22 = vadd.f32 %v2046_v53, %v2045_v48  ;;  %v2048_v55 = vpop.f32.mrb[50].mxu1  ;;  %v1985_v8 = vpop.f32.mrb[51].mxu0 }
 0x180   :  { %v1028_v57 = vadd.f32 %v1983_v52, %v2505_v27  ;;  %v1986_v59 = vadd.f32 %v1985_v8, %v1984_v54  ;;  %v2049_v60 = vpop.f32.mrb[51].mxu1  ;;  %v1175_v61 = vpack.c.bf16 %v1162_v51, %v1161_v50 }
 0x181   :  { %v2050_v26 = vadd.f32 %v2049_v60, %v2048_v55 }
 0x182   :  { %v1125_v11 = vadd.f32 %v2047_v22, %v1028_v57  ;;  %v1031_v62 = vadd.f32 %v1986_v59, %v2508_v29  ;;  %2118 = vmatmul.mubr.bf16.gmra.mrb[68].mxu0 %v1175_v61 }
 0x184   :  { %v1128_v0 = vadd.f32 %v2050_v26, %v1031_v62  ;;  %v1987_v2 = vpop.f32.mrb[52].mxu0  ;;  %v1163_v5 = vmax.f32 %v1125_v11, 0.0  ;;  %v2235_v62 = vld [vmem:[%s2677_s5 + $0x10] sm:$0xff]  }
 0x185   :  { %v2051_v3 = vpop.f32.mrb[52].mxu1  ;;  %v1988_v4 = vpop.f32.mrb[53].mxu0  ;;  %2133 = vmatprep.subr.bf16.mxu1 %v2235_v62 }
 0x186   :  { %v1164_v6 = vmax.f32 %v1128_v0, 0.0  ;;  %v1989_v7 = vadd.f32 %v1988_v4, %v1987_v2  ;;  %v2052_v9 = vpop.f32.mrb[53].mxu1  ;;  %v1990_v12 = vpop.f32.mrb[54].mxu0  ;;  %2134 = vmatpush3.bf16.msra.mxu1 %v2235_v62 }
 0x187   :  { %v2053_v13 = vadd.f32 %v2052_v9, %v2051_v3  ;;  %v2054_v40 = vpop.f32.mrb[54].mxu1  ;;  %v1991_v27 = vpop.f32.mrb[55].mxu0 }
 0x188   :  { %v1036_v14 = vadd.f32 %v1989_v7, %v2511_v45  ;;  %v1992_v15 = vadd.f32 %v1991_v27, %v1990_v12  ;;  %v2055_v16 = vpop.f32.mrb[55].mxu1  ;;  %v1176_v17 = vpack.c.bf16 %v1164_v6, %v1163_v5 }
 0x189   :  { %v2056_v19 = vadd.f32 %v2055_v16, %v2054_v40 }
 0x18a   :  { %v1133_v29 = vadd.f32 %v2053_v13, %v1036_v14  ;;  %v1039_v42 = vadd.f32 %v1992_v15, %v2514_v47  ;;  %2121 = vmatprep.mubr.bf16.mxu0 %v1176_v17 }
 0x18c   :  { %v1136_v21 = vadd.f32 %v2056_v19, %v1039_v42  ;;  %v1993_v23 = vpop.f32.mrb[56].mxu0  ;;  %v1165_v28 = vmax.f32 %v1133_v29, 0.0 }
 0x18d   :  { %v2057_v24 = vpop.f32.mrb[56].mxu1  ;;  %v1994_v25 = vpop.f32.mrb[57].mxu0 }
 0x18e   :  { %v1166_v30 = vmax.f32 %v1136_v21, 0.0  ;;  %v1995_v31 = vadd.f32 %v1994_v25, %v1993_v23  ;;  %v2058_v32 = vpop.f32.mrb[57].mxu1  ;;  %v1996_v33 = vpop.f32.mrb[58].mxu0 }
 0x18f   :  { %v2059_v34 = vadd.f32 %v2058_v32, %v2057_v24  ;;  %v2060_v35 = vpop.f32.mrb[58].mxu1  ;;  %v1997_v45 = vpop.f32.mrb[59].mxu0 }
 0x190   :  { %v1044_v36 = vadd.f32 %v1995_v31, %v2517_v63  ;;  %v1998_v37 = vadd.f32 %v1997_v45, %v1996_v33  ;;  %v2061_v56 = vpop.f32.mrb[59].mxu1  ;;  %v1177_v38 = vpack.c.bf16 %v1166_v30, %v1165_v28 }
 0x191   :  { %v2062_v39 = vadd.f32 %v2061_v56, %v2060_v35 }
 0x192   :  { %v1141_v47 = vadd.f32 %v2059_v34, %v1044_v36  ;;  %v1047_v10 = vadd.f32 %v1998_v37, %v2520_v1  ;;  %2122 = vmatmul.mubr.bf16.gmra.mrb[72].mxu0 %v1177_v38 }
 0x194   :  { %v1144_v41 = vadd.f32 %v2062_v39, %v1047_v10  ;;  %v1999_v58 = vpop.f32.mrb[60].mxu0  ;;  %v1167_v46 = vmax.f32 %v1141_v47, 0.0 }
 0x195   :  { %v2063_v43 = vpop.f32.mrb[60].mxu1  ;;  %v2000_v44 = vpop.f32.mrb[61].mxu0 }
 0x196   :  { %v1168_v48 = vmax.f32 %v1144_v41, 0.0  ;;  %v2001_v49 = vadd.f32 %v2000_v44, %v1999_v58  ;;  %v2064_v50 = vpop.f32.mrb[61].mxu1  ;;  %v2002_v51 = vpop.f32.mrb[62].mxu0 }
 0x197   :  { %v2065_v52 = vadd.f32 %v2064_v50, %v2063_v43  ;;  %v2066_v53 = vpop.f32.mrb[62].mxu1  ;;  %v2003_v63 = vpop.f32.mrb[63].mxu0 }
 0x198   :  { %v1052_v54 = vadd.f32 %v2001_v49, %v2523_v18  ;;  %v2004_v22 = vadd.f32 %v2003_v63, %v2002_v51  ;;  %v2067_v55 = vpop.f32.mrb[63].mxu1  ;;  %v1178_v8 = vpack.c.bf16 %v1168_v48, %v1167_v46  ;;  %v2236_v18 = vld [vmem:[%s2677_s5 + $0x18] sm:$0xff]  }
 0x199   :  { %v2068_v57 = vadd.f32 %v2067_v55, %v2066_v53  ;;  %2135 = vmatprep.subr.bf16.mxu1 %v2236_v18 }
 0x19a   :  { %v1149_v1 = vadd.f32 %v2065_v52, %v1052_v54  ;;  %v1055_v59 = vadd.f32 %v2004_v22, %v2526_v20  ;;  %2125 = vmatprep.mubr.bf16.mxu0 %v1178_v8  ;;  %2136 = vmatpush3.bf16.msra.mxu1 %v2236_v18  ;;  %v1791_v20 = vld [vmem:[%s2676_s4] ss:$0 sm:$0xff] }
 0x19c   :  { %v1152_v60 = vadd.f32 %v2068_v57, %v1055_v59  ;;  %v1169_v61 = vmax.f32 %v1149_v1, 0.0  ;;  %v1800_v59 = vld [vmem:[%s2678_s6] ss:$0 sm:$0xff]  ;;  %s2378_s6 = smov [#allocation7]  }
 0x19d   :  { %s1713_s27 = sshll.u32 %s2378_s6, 4  ;;  %s1714_s27 = int_to_ptr.vmem [resolvable:$true] %s1713_s27 }
 0x19e   :  { %v1170_v26 = vmax.f32 %v1152_v60, 0.0  ;;  %s2345_s28 = scalar_lea.vmem %s1714_s27, 2048  ;;  %p2350_p3 = scmp.lt.s32.totalorder %s1714_s27, %s1714_s27 }
 0x19f   :  { %p2346_p2 = scmp.ne.s32.totalorder %s1714_s27, %s2345_s28  ;;  %p2351_p4 = scmp.lt.s32.totalorder %s2345_s28, %s2345_s28 }
 0x1a0   :  { %v1179_v11 = vpack.c.bf16 %v1170_v26, %v1169_v61 }
 0x1a1   :  { %p2352_p5 = por %p2351_p4, %p2350_p3 }
 0x1a2   :  { %2126 = vmatmul.mubr.bf16.gmra.mrb[76].mxu0 %v1179_v11 }
 0x1a3   :  { %p2353_p6 = pnand %p2352_p5, %p2346_p2 }
 0x245   :  { %v2115_v0 = vpop.f32.mrb[64].mxu0 }
 0x246   :  { %v1293_v2 = vadd.f32 %v2115_v0, %v1791_v20  ;;  %v1284_v3 = vpop.f32.mrb[65].mxu0 }
 0x247   :  { %v1285_v4 = vadd.f32 %v1791_v20, %v1284_v3  ;;  %v2116_v5 = vpop.f32.mrb[66].mxu0 }
 0x248   :  { %v1296_v6 = vadd.f32 %v2116_v5, %v1791_v20  ;;  %v1287_v7 = vpop.f32.mrb[67].mxu0  ;;  %v1349_v12 = vmax.f32 %v1293_v2, 0.0 }
 0x249   :  { %v1288_v9 = vadd.f32 %v1791_v20, %v1287_v7  ;;  %v1347_v40 = vmax.f32 %v1285_v4, 0.0 }
 0x24a   :  { %v1350_v13 = vmax.f32 %v1296_v6, 0.0 }
 0x24b   :  { %v1348_v27 = vmax.f32 %v1288_v9, 0.0 }
 0x24c   :  { %v1365_v14 = vpack.c.bf16 %v1350_v13, %v1349_v12 }
 0x24d   :  { %v1364_v15 = vpack.c.bf16 %v1348_v27, %v1347_v40 }
 0x24f   :  { %2137 = vmatprep.mubr.msk.bf16.mxu1 %vm1410_vm0, %v1364_v15 }
 0x250   :  { %2138 = vmatmul.mubr.msk.bf16.vlgmr.msra.gmra.mrb[64].mxu1 %vm1410_vm0, %v1365_v14 }
 0x255   :  { %v2119_v16 = vpop.f32.mrb[68].mxu0 }
 0x256   :  { %v1309_v17 = vadd.f32 %v2119_v16, %v1791_v20  ;;  %v1300_v19 = vpop.f32.mrb[69].mxu0 }
 0x257   :  { %v1301_v29 = vadd.f32 %v1791_v20, %v1300_v19  ;;  %v2120_v42 = vpop.f32.mrb[70].mxu0 }
 0x258   :  { %v1312_v21 = vadd.f32 %v2120_v42, %v1791_v20  ;;  %v1303_v23 = vpop.f32.mrb[71].mxu0  ;;  %v1353_v25 = vmax.f32 %v1309_v17, 0.0 }
 0x259   :  { %v1304_v24 = vadd.f32 %v1791_v20, %v1303_v23  ;;  %v1351_v30 = vmax.f32 %v1301_v29, 0.0 }
 0x25a   :  { %v1354_v28 = vmax.f32 %v1312_v21, 0.0 }
 0x25b   :  { %v1352_v31 = vmax.f32 %v1304_v24, 0.0 }
 0x25c   :  { %v1367_v32 = vpack.c.bf16 %v1354_v28, %v1353_v25 }
 0x25d   :  { %v1366_v33 = vpack.c.bf16 %v1352_v31, %v1351_v30 }
 0x25f   :  { %2141 = vmatprep.mubr.msk.bf16.mxu1 %vm1410_vm0, %v1366_v33 }
 0x260   :  { %2142 = vmatmul.mubr.msk.bf16.gmra.mrb[68].mxu1 %vm1410_vm0, %v1367_v32 }
 0x265   :  { %v2123_v34 = vpop.f32.mrb[72].mxu0 }
 0x266   :  { %v1325_v35 = vadd.f32 %v2123_v34, %v1791_v20  ;;  %v1316_v45 = vpop.f32.mrb[73].mxu0 }
 0x267   :  { %v1317_v36 = vadd.f32 %v1791_v20, %v1316_v45  ;;  %v2124_v37 = vpop.f32.mrb[74].mxu0 }
 0x268   :  { %v1328_v56 = vadd.f32 %v2124_v37, %v1791_v20  ;;  %v1319_v38 = vpop.f32.mrb[75].mxu0  ;;  %v1357_v47 = vmax.f32 %v1325_v35, 0.0 }
 0x269   :  { %v1320_v39 = vadd.f32 %v1791_v20, %v1319_v38  ;;  %v1355_v41 = vmax.f32 %v1317_v36, 0.0 }
 0x26a   :  { %v1358_v10 = vmax.f32 %v1328_v56, 0.0 }
 0x26b   :  { %v1356_v58 = vmax.f32 %v1320_v39, 0.0 }
 0x26c   :  { %v1369_v43 = vpack.c.bf16 %v1358_v10, %v1357_v47 }
 0x26d   :  { %v1368_v44 = vpack.c.bf16 %v1356_v58, %v1355_v41 }
 0x26f   :  { %2145 = vmatprep.mubr.msk.bf16.mxu1 %vm1410_vm0, %v1368_v44 }
 0x270   :  { %2146 = vmatmul.mubr.msk.bf16.gmra.mrb[72].mxu1 %vm1410_vm0, %v1369_v43 }
 0x275   :  { %v2127_v46 = vpop.f32.mrb[76].mxu0 }
 0x276   :  { %v1341_v48 = vadd.f32 %v2127_v46, %v1791_v20  ;;  %v1332_v49 = vpop.f32.mrb[77].mxu0 }
 0x277   :  { %v1333_v50 = vadd.f32 %v1791_v20, %v1332_v49  ;;  %v2128_v51 = vpop.f32.mrb[78].mxu0 }
 0x278   :  { %v1344_v52 = vadd.f32 %v2128_v51, %v1791_v20  ;;  %v1335_v53 = vpop.f32.mrb[79].mxu0  ;;  %v1361_v54 = vmax.f32 %v1341_v48, 0.0 }
 0x279   :  { %v1336_v63 = vadd.f32 %v1791_v20, %v1335_v53  ;;  %v1359_v55 = vmax.f32 %v1333_v50, 0.0 }
 0x27a   :  { %v1362_v22 = vmax.f32 %v1344_v52, 0.0 }
 0x27b   :  { %v1360_v8 = vmax.f32 %v1336_v63, 0.0 }
 0x27c   :  { %v1371_v57 = vpack.c.bf16 %v1362_v22, %v1361_v54 }
 0x27d   :  { %v1370_v1 = vpack.c.bf16 %v1360_v8, %v1359_v55 }
 0x27f   :  { %2149 = vmatprep.mubr.msk.bf16.mxu1 %vm1410_vm0, %v1370_v1 }
 0x280   :  { %2150 = vmatmul.mubr.msk.bf16.gmra.mrb[76].mxu1 %vm1410_vm0, %v1371_v57 }
 0x323   :  { %v2139_v60 = vpop.f32.mrb[64].mxu1 }
 0x324   :  { %v1478_v61 = vadd.f32 %v2139_v60, %v1800_v59  ;;  %v1469_v26 = vpop.f32.mrb[65].mxu1 }
 0x325   :  { %v1470_v11 = vadd.f32 %v1800_v59, %v1469_v26  ;;  %v2140_v62 = vpop.f32.mrb[66].mxu1 }
 0x326   :  { %1536 = vmax.xlane.f32.xlu1 %v1478_v61  ;;  %v1472_v18 = vpop.f32.mrb[67].mxu1  ;;  %v1481_v20 = vadd.f32 %v2140_v62, %v1800_v59 }
 0x327   :  { %1532 = vmax.xlane.f32.xlu0 %v1470_v11  ;;  %v1473_v0 = vadd.f32 %v1800_v59, %v1472_v18 }
 0x32a   :  { %1538 = vmax.xlane.f32.xlu1 %v1481_v20 }
 0x32b   :  { %1534 = vmax.xlane.f32.xlu0 %v1473_v0 }
 0x333   :  { %v2143_v2 = vpop.f32.mrb[68].mxu1 }
 0x334   :  { %v1494_v3 = vadd.f32 %v2143_v2, %v1800_v59  ;;  %v1485_v4 = vpop.f32.mrb[69].mxu1 }
 0x335   :  { %v2144_v5 = vpop.f32.mrb[70].mxu1  ;;  %v1486_v9 = vadd.f32 %v1800_v59, %v1485_v4 }
 0x336   :  { %v1497_v6 = vadd.f32 %v2144_v5, %v1800_v59  ;;  %v1488_v7 = vpop.f32.mrb[71].mxu1  ;;  %1544 = vmax.xlane.f32.xlu0 %v1494_v3 }
 0x337   :  { %v1489_v12 = vadd.f32 %v1800_v59, %v1488_v7 }
 0x338   :  { %1546 = vmax.xlane.f32.xlu1 %v1497_v6 }
 0x33a   :  { %1540 = vmax.xlane.f32.xlu0 %v1486_v9 }
 0x33c   :  { %1542 = vmax.xlane.f32.xlu1 %v1489_v12 }
 0x343   :  { %v2147_v13 = vpop.f32.mrb[72].mxu1 }
 0x344   :  { %v2564_v40 = vadd.f32 %v2147_v13, %v1800_v59  ;;  %v1501_v27 = vpop.f32.mrb[73].mxu1 }
 0x345   :  { %v2148_v14 = vpop.f32.mrb[74].mxu1  ;;  %v2569_v17 = vadd.f32 %v1800_v59, %v1501_v27 }
 0x346   :  { %v2566_v15 = vadd.f32 %v2148_v14, %v1800_v59  ;;  %v1504_v16 = vpop.f32.mrb[75].mxu1  ;;  %1552 = vmax.xlane.f32.xlu0 %v2564_v40 }
 0x347   :  { %v2572_v19 = vadd.f32 %v1800_v59, %v1504_v16 }
 0x348   :  { %1554 = vmax.xlane.f32.xlu1 %v2566_v15 }
 0x34a   :  { %1548 = vmax.xlane.f32.xlu0 %v2569_v17 }
 0x34c   :  { %1550 = vmax.xlane.f32.xlu1 %v2572_v19 }
 0x353   :  { %v2151_v29 = vpop.f32.mrb[76].mxu1 }
 0x354   :  { %v1517_v42 = vpop.f32.mrb[77].mxu1  ;;  %v2581_v28 = vadd.f32 %v2151_v29, %v1800_v59 }
 0x355   :  { %v2576_v21 = vadd.f32 %v1800_v59, %v1517_v42  ;;  %v2152_v23 = vpop.f32.mrb[78].mxu1 }
 0x356   :  { %v1520_v24 = vpop.f32.mrb[79].mxu1  ;;  %v2584_v30 = vadd.f32 %v2152_v23, %v1800_v59 }
 0x357   :  { %v2578_v25 = vadd.f32 %v1800_v59, %v1520_v24  ;;  %1556 = vmax.xlane.f32.xlu0 %v2576_v21 }
 0x359   :  { %1558 = vmax.xlane.f32.xlu1 %v2578_v25 }
 0x35b   :  { %1560 = vmax.xlane.f32.xlu0 %v2581_v28 }
 0x35d   :  { %1562 = vmax.xlane.f32.xlu1 %v2584_v30 }
 0x3b3   :  { %v1537_v31 = vpop.xlane.xlu1 %1536 }
 0x3b4   :  { %v2588_v32 = vsub.f32 %v1478_v61, %v1537_v31  ;;  %v1533_v33 = vpop.xlane.xlu0 %1532 }
 0x3b5   :  { %v2590_v34 = vsub.f32 %v1470_v11, %v1533_v33 }
 0x3b6   :  { %v1584_v35 = vmul.f32 1.442695, %v2588_v32 }
 0x3b7   :  { %v1580_v45 = vmul.f32 1.442695, %v2590_v34  ;;  %v1539_v36 = vpop.xlane.xlu1 %1538 }
 0x3b8   :  { %2237 = vpow2.f32 %v1584_v35  ;;  %v2594_v37 = vsub.f32 %v1481_v20, %v1539_v36  ;;  %v1535_v56 = vpop.xlane.xlu0 %1534 }
 0x3b9   :  { %v2596_v38 = vsub.f32 %v1473_v0, %v1535_v56  ;;  %2239 = vpow2.f32 %v1580_v45 }
 0x3ba   :  { %v1586_v39 = vmul.f32 1.442695, %v2594_v37 }
 0x3bb   :  { %v1582_v47 = vmul.f32 1.442695, %v2596_v38 }
 0x3bc   :  { %2241 = vpow2.f32 %v1586_v39 }
 0x3bd   :  { %2243 = vpow2.f32 %v1582_v47 }
 0x3c2   :  { %v2238_v10 = vpop.eup %2237 }
 0x3c3   :  { %1616 = vadd.xlane.f32.xlu0 %v2238_v10  ;;  %v1545_v41 = vpop.xlane.xlu0 %1544  ;;  %v2240_v43 = vpop.eup %2239 }
 0x3c4   :  { %v2600_v58 = vsub.f32 %v1494_v3, %v1545_v41 }
 0x3c5   :  { %v1547_v44 = vpop.xlane.xlu1 %1546 }
 0x3c6   :  { %v2242_v46 = vpop.eup %2241  ;;  %v1592_v48 = vmul.f32 1.442695, %v2600_v58  ;;  %v2603_v49 = vsub.f32 %v1497_v6, %v1547_v44 }
 0x3c7   :  { %1618 = vadd.xlane.f32.xlu1 %v2242_v46  ;;  %1612 = vadd.xlane.f32.xlu0 %v2240_v43  ;;  %v1541_v50 = vpop.xlane.xlu0 %1540  ;;  %v2244_v63 = vpop.eup %2243 }
 0x3c8   :  { %2245 = vpow2.f32 %v1592_v48  ;;  %v1594_v51 = vmul.f32 1.442695, %v2603_v49  ;;  %v2606_v52 = vsub.f32 %v1486_v9, %v1541_v50 }
 0x3c9   :  { %v1543_v53 = vpop.xlane.xlu1 %1542 }
 0x3ca   :  { %2247 = vpow2.f32 %v1594_v51  ;;  %v1588_v54 = vmul.f32 1.442695, %v2606_v52  ;;  %v2609_v22 = vsub.f32 %v1489_v12, %v1543_v53 }
 0x3cb   :  { %1614 = vadd.xlane.f32.xlu1 %v2244_v63 }
 0x3cc   :  { %2249 = vpow2.f32 %v1588_v54  ;;  %v1590_v55 = vmul.f32 1.442695, %v2609_v22 }
 0x3ce   :  { %2251 = vpow2.f32 %v1590_v55 }
 0x3d2   :  { %v2246_v8 = vpop.eup %2245 }
 0x3d3   :  { %1624 = vadd.xlane.f32.xlu0 %v2246_v8  ;;  %v1553_v57 = vpop.xlane.xlu0 %1552 }
 0x3d4   :  { %v2248_v1 = vpop.eup %2247  ;;  %v2613_v59 = vsub.f32 %v2564_v40, %v1553_v57 }
 0x3d5   :  { %v1555_v60 = vpop.xlane.xlu1 %1554  ;;  %1626 = vadd.xlane.f32.xlu1 %v2248_v1 }
 0x3d6   :  { %v2250_v61 = vpop.eup %2249  ;;  %v1600_v26 = vmul.f32 1.442695, %v2613_v59  ;;  %v2617_v11 = vsub.f32 %v2566_v15, %v1555_v60 }
 0x3d7   :  { %1620 = vadd.xlane.f32.xlu0 %v2250_v61  ;;  %v1549_v62 = vpop.xlane.xlu0 %1548 }
 0x3d8   :  { %v2252_v18 = vpop.eup %2251  ;;  %2253 = vpow2.f32 %v1600_v26  ;;  %v1602_v20 = vmul.f32 1.442695, %v2617_v11  ;;  %v2621_v0 = vsub.f32 %v2569_v17, %v1549_v62 }
 0x3d9   :  { %v1551_v2 = vpop.xlane.xlu1 %1550  ;;  %1622 = vadd.xlane.f32.xlu1 %v2252_v18 }
 0x3da   :  { %2255 = vpow2.f32 %v1602_v20  ;;  %v1596_v3 = vmul.f32 1.442695, %v2621_v0  ;;  %v2625_v4 = vsub.f32 %v2572_v19, %v1551_v2 }
 0x3dc   :  { %2257 = vpow2.f32 %v1596_v3  ;;  %v1598_v5 = vmul.f32 1.442695, %v2625_v4 }
 0x3de   :  { %2259 = vpow2.f32 %v1598_v5 }
 0x3e2   :  { %v2254_v6 = vpop.eup %2253 }
 0x3e3   :  { %1632 = vadd.xlane.f32.xlu0 %v2254_v6 }
 0x3e4   :  { %v2256_v7 = vpop.eup %2255  ;;  %v1557_v9 = vpop.xlane.xlu0 %1556 }
 0x3e5   :  { %v2629_v12 = vsub.f32 %v2576_v21, %v1557_v9  ;;  %1634 = vadd.xlane.f32.xlu1 %v2256_v7 }
 0x3e6   :  { %v2258_v13 = vpop.eup %2257  ;;  %v1559_v40 = vpop.xlane.xlu1 %1558 }
 0x3e7   :  { %v1604_v27 = vmul.f32 1.442695, %v2629_v12  ;;  %v2633_v14 = vsub.f32 %v2578_v25, %v1559_v40  ;;  %1628 = vadd.xlane.f32.xlu0 %v2258_v13 }
 0x3e8   :  { %v2260_v15 = vpop.eup %2259  ;;  %v1561_v16 = vpop.xlane.xlu0 %1560 }
 0x3e9   :  { %2261 = vpow2.f32 %v1604_v27  ;;  %v1606_v17 = vmul.f32 1.442695, %v2633_v14  ;;  %v2637_v19 = vsub.f32 %v2581_v28, %v1561_v16  ;;  %1630 = vadd.xlane.f32.xlu1 %v2260_v15 }
 0x3ea   :  { %v1563_v29 = vpop.xlane.xlu1 %1562 }
 0x3eb   :  { %2263 = vpow2.f32 %v1606_v17  ;;  %v1608_v42 = vmul.f32 1.442695, %v2637_v19  ;;  %v2641_v21 = vsub.f32 %v2584_v30, %v1563_v29 }
 0x3ed   :  { %2265 = vpow2.f32 %v1608_v42  ;;  %v1610_v23 = vmul.f32 1.442695, %v2641_v21 }
 0x3ef   :  { %2267 = vpow2.f32 %v1610_v23 }
 0x3f3   :  { %v2262_v24 = vpop.eup %2261 }
 0x3f4   :  { %1636 = vadd.xlane.f32.xlu0 %v2262_v24 }
 0x3f5   :  { %v2264_v25 = vpop.eup %2263 }
 0x3f6   :  { %1638 = vadd.xlane.f32.xlu1 %v2264_v25 }
 0x3f7   :  { %v2266_v31 = vpop.eup %2265 }
 0x3f8   :  { %1640 = vadd.xlane.f32.xlu0 %v2266_v31 }
 0x3f9   :  { %v2268_v28 = vpop.eup %2267 }
 0x3fa   :  { %1642 = vadd.xlane.f32.xlu1 %v2268_v28 }
 0x450   :  { %v1617_v33 = vpop.xlane.xlu0 %1616 }
 0x451   :  { %2269 = vlog2.f32 %v1617_v33 }
 0x454   :  { %v1619_v35 = vpop.xlane.xlu1 %1618  ;;  %v1613_v45 = vpop.xlane.xlu0 %1612 }
 0x455   :  { %2271 = vlog2.f32 %v1619_v35 }
 0x456   :  { %2273 = vlog2.f32 %v1613_v45 }
 0x458   :  { %v1615_v30 = vpop.xlane.xlu1 %1614 }
 0x459   :  { %2275 = vlog2.f32 %v1615_v30 }
 0x45b   :  { %v2270_v36 = vpop.eup %2269 }
 0x45c   :  { %v1649_v56 = vmul.f32 0.6931472, %v2270_v36 }
 0x45e   :  { %v1678_v39 = vsub.f32 %v2588_v32, %v1649_v56 }
 0x45f   :  { %v2272_v47 = vpop.eup %2271 }
 0x460   :  { %v2274_v10 = vpop.eup %2273  ;;  %1694 = vst [vmem:[#allocation7 + $0x10] sm:$0xff] %v1678_v39  ;;  %v1651_v41 = vmul.f32 0.6931472, %v2272_v47  ;;  %v1625_v43 = vpop.xlane.xlu0 %1624 }
 0x461   :  { %v1645_v44 = vmul.f32 0.6931472, %v2274_v10  ;;  %2277 = vlog2.f32 %v1625_v43 }
 0x462   :  { %v1679_v46 = vsub.f32 %v2594_v37, %v1651_v41  ;;  %v1627_v48 = vpop.xlane.xlu1 %1626 }
 0x463   :  { %v2276_v50 = vpop.eup %2275  ;;  %v1676_v51 = vsub.f32 %v2590_v34, %v1645_v44  ;;  %2279 = vlog2.f32 %v1627_v48 }
 0x464   :  { %1695 = vst [vmem:[#allocation7 + $0x18] sm:$0xff] %v1679_v46  ;;  %v1647_v53 = vmul.f32 0.6931472, %v2276_v50  ;;  %v1621_v63 = vpop.xlane.xlu0 %1620 }
 0x465   :  { %1692 = vst [vmem:[#allocation7] sm:$0xff] %v1676_v51  ;;  %2281 = vlog2.f32 %v1621_v63 }
 0x466   :  { %v1677_v32 = vsub.f32 %v2596_v38, %v1647_v53  ;;  %v1623_v54 = vpop.xlane.xlu1 %1622 }
 0x467   :  { %2283 = vlog2.f32 %v1623_v54 }
 0x468   :  { %1693 = vst [vmem:[#allocation7 + $0x8] sm:$0xff] %v1677_v32 }
 0x46b   :  { %v2278_v55 = vpop.eup %2277 }
 0x46c   :  { %v1657_v8 = vmul.f32 0.6931472, %v2278_v55 }
 0x46d   :  { %v2280_v57 = vpop.eup %2279 }
 0x46e   :  { %v1682_v37 = vsub.f32 %v2600_v58, %v1657_v8  ;;  %v1659_v1 = vmul.f32 0.6931472, %v2280_v57 }
 0x46f   :  { %v2282_v60 = vpop.eup %2281 }
 0x470   :  { %1698 = vst [vmem:[#allocation7 + $0x30] sm:$0xff] %v1682_v37  ;;  %v1683_v34 = vsub.f32 %v2603_v49, %v1659_v1  ;;  %v1653_v61 = vmul.f32 0.6931472, %v2282_v60  ;;  %v1633_v26 = vpop.xlane.xlu0 %1632 }
 0x471   :  { %v2284_v62 = vpop.eup %2283  ;;  %2285 = vlog2.f32 %v1633_v26 }
 0x472   :  { %1699 = vst [vmem:[#allocation7 + $0x38] sm:$0xff] %v1683_v34  ;;  %v1680_v38 = vsub.f32 %v2606_v52, %v1653_v61  ;;  %v1655_v18 = vmul.f32 0.6931472, %v2284_v62  ;;  %v1635_v20 = vpop.xlane.xlu1 %1634 }
 0x473   :  { %2287 = vlog2.f32 %v1635_v20 }
 0x474   :  { %1696 = vst [vmem:[#allocation7 + $0x20] sm:$0xff] %v1680_v38  ;;  %v1681_v2 = vsub.f32 %v2609_v22, %v1655_v18  ;;  %v1629_v3 = vpop.xlane.xlu0 %1628 }
 0x475   :  { %2289 = vlog2.f32 %v1629_v3 }
 0x476   :  { %1697 = vst [vmem:[#allocation7 + $0x28] sm:$0xff] %v1681_v2  ;;  %v1631_v58 = vpop.xlane.xlu1 %1630 }
 0x477   :  { %2291 = vlog2.f32 %v1631_v58 }
 0x47b   :  { %v2286_v5 = vpop.eup %2285 }
 0x47c   :  { %v1665_v49 = vmul.f32 0.6931472, %v2286_v5 }
 0x47d   :  { %v2288_v6 = vpop.eup %2287 }
 0x47e   :  { %v1686_v7 = vsub.f32 %v2613_v59, %v1665_v49  ;;  %v1667_v9 = vmul.f32 0.6931472, %v2288_v6 }
 0x47f   :  { %v2290_v13 = vpop.eup %2289 }
 0x480   :  { %1702 = vst [vmem:[#allocation7 + $0x50] sm:$0xff] %v1686_v7  ;;  %v1687_v52 = vsub.f32 %v2617_v11, %v1667_v9  ;;  %v1661_v40 = vmul.f32 0.6931472, %v2290_v13 }
 0x481   :  { %v2292_v27 = vpop.eup %2291  ;;  %v1637_v15 = vpop.xlane.xlu0 %1636 }
 0x482   :  { %1703 = vst [vmem:[#allocation7 + $0x58] sm:$0xff] %v1687_v52  ;;  %v1684_v22 = vsub.f32 %v2621_v0, %v1661_v40  ;;  %v1663_v16 = vmul.f32 0.6931472, %v2292_v27  ;;  %2293 = vlog2.f32 %v1637_v15 }
 0x483   :  { %v1639_v17 = vpop.xlane.xlu1 %1638 }
 0x484   :  { %1700 = vst [vmem:[#allocation7 + $0x40] sm:$0xff] %v1684_v22  ;;  %v1685_v29 = vsub.f32 %v2625_v4, %v1663_v16  ;;  %2295 = vlog2.f32 %v1639_v17 }
 0x485   :  { %v1641_v42 = vpop.xlane.xlu0 %1640 }
 0x486   :  { %1701 = vst [vmem:[#allocation7 + $0x48] sm:$0xff] %v1685_v29  ;;  %2297 = vlog2.f32 %v1641_v42 }
 0x487   :  { %v1643_v59 = vpop.xlane.xlu1 %1642 }
 0x488   :  { %2299 = vlog2.f32 %v1643_v59 }
 0x48c   :  { %v2294_v23 = vpop.eup %2293 }
 0x48d   :  { %v1669_v11 = vmul.f32 0.6931472, %v2294_v23 }
 0x48e   :  { %v2296_v24 = vpop.eup %2295 }
 0x48f   :  { %v1688_v25 = vsub.f32 %v2629_v12, %v1669_v11  ;;  %v1671_v31 = vmul.f32 0.6931472, %v2296_v24 }
 0x490   :  { %v2298_v28 = vpop.eup %2297 }
 0x491   :  { %1704 = vst [vmem:[#allocation7 + $0x60] sm:$0xff] %v1688_v25  ;;  %v1689_v0 = vsub.f32 %v2633_v14, %v1671_v31  ;;  %v1673_v33 = vmul.f32 0.6931472, %v2298_v28 }
 0x492   :  { %v2300_v35 = vpop.eup %2299 }
 0x493   :  { %1705 = vst [vmem:[#allocation7 + $0x68] sm:$0xff] %v1689_v0  ;;  %v1690_v4 = vsub.f32 %v2637_v19, %v1673_v33  ;;  %v1675_v45 = vmul.f32 0.6931472, %v2300_v35 }
 0x495   :  { %1706 = vst [vmem:[#allocation7 + $0x70] sm:$0xff] %v1690_v4  ;;  %v1691_v30 = vsub.f32 %v2641_v21, %v1675_v45 }
 0x497   :  { %1707 = vst [vmem:[#allocation7 + $0x78] sm:$0xff] %v1691_v30 }
 0x498   :  { %2356 = shalt.err (!%p2353_p6)
}
 0x499   :  { %s2357_s8 = scalar_lea.hbm %s2679_s7, 2048 }
 0x49a   :  { %p2358_p7 = scmp.ne.s32.totalorder %s2679_s7, %s2357_s8  ;;  %p2361_p8 = scmp.lt.u32.totalorder %s2357_s8, %s2679_s7 }
 0x49c   :  { %p2363_p9 = pnand %p2361_p8, %p2358_p7 }
 0x49e   :  { %2366 = shalt.err (!%p2363_p9)
}
 0x49f   :  { %s2379_s13 = smov 128   ;;  %s2380_s14 = smov 8  }
 0x4a0   :  { %1719 = dma.vmem_to_hbm [thread:$0]  %s1714_s27, 2048, %s2679_s7, [#allocation4], %s2379_s13, %s2379_s13, %s2380_s14  }
 0x4a1   :  { %2371 = dma.done.wait [#allocation4], 2048  }
 0x4a2   :  { %2372 = vsyncadd [#allocation4], 4294965248 }
 0x4a3   :  { %1723 = vsyncpa [#allocation3], 1 }
 0x4a4   :  { %1724 = vsyncpa [#allocation6], 1 }
 0x4a5   :  { %1725 = vsyncpa [#allocation4], 1 }

</bundles_post_ra>
